<compile_context>
chip_gen: v7x
topology: tpu7x:2x2x1
jax: 0.10.0
libtpu: 0.0.40
codegen_flags: <defaults>
</compile_context>

<pallas_src>
import functools
import math

import jax
import jax.numpy as jnp
from jax import lax
from jax.experimental import pallas as pl
from jax.experimental.pallas import tpu as pltpu

# ----------------------------- configuration ------------------------------
VOCAB = 64
MASK_TOKEN_ID = VOCAB - 1
D_MODEL = 32
N_HEADS = 2
HEAD_DIM = D_MODEL // N_HEADS
FFN = 64
N_LAYERS = 2
SEQ = 8
BATCH = 2
VOCAB_PAD = ((VOCAB + 127) // 128) * 128   # lane-dense logits store


# ------------------------------ kernel helpers -----------------------------
def _layernorm(v, g, b):
    mu = jnp.mean(v, axis=-1, keepdims=True)
    var = jnp.mean((v - mu) ** 2, axis=-1, keepdims=True)
    return (v - mu) * lax.rsqrt(var + 1e-5) * g + b


def _gelu(x):
    # TODO(synk): PyTorch nn.GELU defaults to exact erf; tanh approximation used
    # (transformer internals are unspecified and tanh lowers on every backend).
    c = math.sqrt(2.0 / math.pi)
    return 0.5 * x * (1.0 + jnp.tanh(c * (x + 0.044715 * x * x * x)))


def _hash_uniform(idx, seed):
    """Per-element uniform in [0,1) from an int32 mixing hash.

    Portable replacement for pltpu.prng_random_bits (which has no CPU/interpret
    lowering). Sign bit is cleared before every shift so arithmetic >> behaves
    as a logical shift; int32 multiply wraps mod 2^32 (XLA / VPU semantics).
    """
    x = idx * jnp.int32(1000003) + seed * jnp.int32(374761393) + jnp.int32(12345)
    for shift, mult in ((15, 668265263), (13, 1274126177), (16, 1)):
        x = jnp.bitwise_and(x, jnp.int32(0x7FFFFFFF))
        x = x ^ (x >> shift)
        x = x * jnp.int32(mult)
    x = jnp.bitwise_and(x, jnp.int32(0x7FFFFFFF))
    u24 = x >> 7                                   # 24 random bits
    return u24.astype(jnp.float32) * jnp.float32(1.0 / (1 << 24))


# --------------------------- fused forward kernel ---------------------------
def _fused_forward_kernel(
        # scalars (SMEM)
        seed_ref, prob_ref,
        # data (VMEM)
        ids_ref,                     # (B*S, 1) int32
        pos_ref,                     # (B*S, D) f32  (position emb pre-tiled over batch)
        bias_ref,                    # (B*S, B*S) f32 block-diagonal additive attn bias
        tok_emb_ref,                 # (V, D)
        # per-layer params, stacked across layers (VMEM)
        ln1g_ref, ln1b_ref,          # (L, 1, D)
        wqkv_ref, bqkv_ref,          # (L, D, 3D), (L, 1, 3D)   (q part pre-scaled)
        wo_ref, bo_ref,              # (L, D, D), (L, 1, D)
        ln2g_ref, ln2b_ref,          # (L, 1, D)
        w1_ref, b1_ref,              # (L, D, F), (L, 1, F)
        w2_ref, b2_ref,              # (L, F, D), (L, 1, D)
        # head params (VMEM)
        lnfg_ref, lnfb_ref,          # (1, D)
        whead_ref, bhead_ref,        # (D, Vpad), (1, Vpad)
        # outputs
        logits_ref,                  # (B*S, Vpad) f32   (lane-dense store)
        masked_ref,                  # (B*S, 1) int32
        maskint_ref,                 # (B*S, 1) int32
        *, n_layers, n_heads, head_dim, mask_token_id):
    bs = ids_ref.shape[0]
    d = pos_ref.shape[1]
    vocab = tok_emb_ref.shape[0]

    seed = seed_ref[0]
    prob = prob_ref[0]

    # ---- 1) Bernoulli(t) masking, fully in-kernel (no HBM round trip) ----
    tok_idx = lax.broadcasted_iota(jnp.int32, (bs, 1), 0)
    u = _hash_uniform(tok_idx, seed)
    mask = u < prob                                         # (bs, 1) bool
    ids = ids_ref[...]
    masked_ids = jnp.where(mask, jnp.int32(mask_token_id), ids)
    masked_ref[...] = masked_ids
    maskint_ref[...] = mask.astype(jnp.int32)

    # ---- 2) token embedding as a one-hot matmul on the MXU + pos emb ----
    onehot = (masked_ids == lax.broadcasted_iota(jnp.int32, (bs, vocab), 1)
              ).astype(jnp.float32)
    x = jnp.dot(onehot, tok_emb_ref[...], preferred_element_type=jnp.float32)
    x = x + pos_ref[...]

    bias = bias_ref[...]                                    # (bs, bs)

    # ---- 3) transformer layers (unrolled, batch folded into the row dim) ----
    for li in range(n_layers):
        # --- attention (pre-LN), fused QKV, single output projection ---
        h = _layernorm(x, ln1g_ref[li], ln1b_ref[li])
        qkv = (jnp.dot(h, wqkv_ref[li], preferred_element_type=jnp.float32)
               + bqkv_ref[li])                              # (bs, 3D)
        ctx_heads = []
        for hh in range(n_heads):
            lo = hh * head_dim
            qh = qkv[:, lo:lo + head_dim]                   # scale already folded in
            kh = qkv[:, d + lo:d + lo + head_dim]
            vh = qkv[:, 2 * d + lo:2 * d + lo + head_dim]
            s = lax.dot_general(qh, kh, (((1,), (1,)), ((), ())),
                                preferred_element_type=jnp.float32)   # q @ k^T
            s = s + bias
            s = s - jnp.max(s, axis=-1, keepdims=True)
            e = jnp.exp(s)
            # NOTE: plain divide kept instead of pl.reciprocal(approx=True) so the
            # kernel also runs under the CPU interpret fallback; negligible here.
            p = e / jnp.sum(e, axis=-1, keepdims=True)
            ctx_heads.append(jnp.dot(p, vh, preferred_element_type=jnp.float32))
        ctx = jnp.concatenate(ctx_heads, axis=-1)           # (bs, D)
        attn_out = (jnp.dot(ctx, wo_ref[li], preferred_element_type=jnp.float32)
                    + bo_ref[li])
        x = x + attn_out

        # --- MLP (pre-LN) ---
        h2 = _layernorm(x, ln2g_ref[li], ln2b_ref[li])
        f = jnp.dot(h2, w1_ref[li], preferred_element_type=jnp.float32) + b1_ref[li]
        f = _gelu(f)
        f = jnp.dot(f, w2_ref[li], preferred_element_type=jnp.float32) + b2_ref[li]
        x = x + f

    # ---- 4) final LN + LM head (lane-dense padded logits) ----
    hf = _layernorm(x, lnfg_ref[...], lnfb_ref[...])
    logits_ref[...] = (jnp.dot(hf, whead_ref[...], preferred_element_type=jnp.float32)
                       + bhead_ref[...])


# ------------------------------- wrapper ------------------------------------
@jax.jit
def _forward_jit(input_ids, attention_mask, t, seed, params):
    B, S = input_ids.shape
    BS = B * S
    V = params["tok_emb"].shape[0]
    VP = params["w_head"].shape[1]

    # Cheap XLA-side input prep (no intermediate HBM round trips between kernels).
    ids_col = input_ids.astype(jnp.int32).reshape(BS, 1)
    pos_tiled = jnp.tile(params["pos_emb"][:S], (B, 1))                 # (BS, D)
    am = attention_mask.astype(jnp.float32)
    key_bias = ((1.0 - am) * jnp.float32(-1e9)).reshape(BS)
    row_b = jnp.arange(BS, dtype=jnp.int32)[:, None] // S
    col_b = jnp.arange(BS, dtype=jnp.int32)[None, :] // S
    attn_bias = jnp.where(row_b == col_b, key_bias[None, :], jnp.float32(-1e9))

    seed_arr = seed.astype(jnp.int32).reshape(1)
    prob_arr = t.astype(jnp.float32).reshape(1)     # runtime scalar -> no recompile per t

    kern = functools.partial(
        _fused_forward_kernel,
        n_layers=params["wqkv"].shape[0], n_heads=N_HEADS,
        head_dim=HEAD_DIM, mask_token_id=MASK_TOKEN_ID)

    smem = pl.BlockSpec(memory_space=pltpu.MemorySpace.SMEM)
    vmem = pl.BlockSpec(memory_space=pltpu.MemorySpace.VMEM)

    inputs = [
        seed_arr, prob_arr,
        ids_col, pos_tiled, attn_bias, params["tok_emb"],
        params["ln1_g"], params["ln1_b"],
        params["wqkv"], params["bqkv"],
        params["wo"], params["bo"],
        params["ln2_g"], params["ln2_b"],
        params["w1"], params["b1"],
        params["w2"], params["b2"],
        params["lnf_g"], params["lnf_b"],
        params["w_head"], params["b_head"],
    ]
    in_specs = [smem, smem] + [vmem] * (len(inputs) - 2)

    logits_pad, masked_col, maskint_col = pl.pallas_call(
        kern,
        out_shape=(jax.ShapeDtypeStruct((BS, VP), jnp.float32),
                   jax.ShapeDtypeStruct((BS, 1), jnp.int32),
                   jax.ShapeDtypeStruct((BS, 1), jnp.int32)),
        in_specs=in_specs,
        out_specs=(vmem, vmem, vmem),
    )(*inputs)

    logits = logits_pad[:, :V].reshape(B, S, V)
    masked_ids = masked_col.reshape(B, S)
    mask_indices = maskint_col.reshape(B, S).astype(jnp.bool_)
    return logits, masked_ids, mask_indices


def diffusion_lm_forward(input_ids, attention_mask, *, t, seed, params):
    # TODO(synk): the t=None branch of the PyTorch forward draws mask_prob from
    # Python's random.random(); an explicit t is required here.
    B, S = input_ids.shape
    if attention_mask is None:
        attention_mask = jnp.ones((B, S), dtype=jnp.int32)
    t = jnp.asarray(t, dtype=jnp.float32)
    seed = jnp.asarray(seed, dtype=jnp.int32)
    return _forward_jit(input_ids, attention_mask, t, seed, params)


# ---------------------------- parameter init --------------------------------
def init_params(key):
    ks = jax.random.split(key, 3 + 6 * N_LAYERS)
    scale = 0.02

    def nrm(k, shape):
        return (jax.random.normal(k, shape) * scale).astype(jnp.float32)

    w_head = jnp.pad(nrm(ks[2], (D_MODEL, VOCAB)), ((0, 0), (0, VOCAB_PAD - VOCAB)))
    params = {
        "tok_emb": nrm(ks[0], (VOCAB, D_MODEL)),
        "pos_emb": nrm(ks[1], (SEQ, D_MODEL)),
        "lnf_g": jnp.ones((1, D_MODEL), jnp.float32),
        "lnf_b": jnp.zeros((1, D_MODEL), jnp.float32),
        "w_head": w_head,                                   # (D, VOCAB_PAD)
        "b_head": jnp.zeros((1, VOCAB_PAD), jnp.float32),
    }

    attn_scale = 1.0 / math.sqrt(HEAD_DIM)
    ln1g, ln1b, wqkv, bqkv, wo, bo = [], [], [], [], [], []
    ln2g, ln2b, w1, b1, w2, b2 = [], [], [], [], [], []
    for li in range(N_LAYERS):
        k = jax.random.split(ks[3 + li], 6)
        wq = nrm(k[0], (D_MODEL, D_MODEL)) * attn_scale     # fold 1/sqrt(hd) into Q
        wk = nrm(k[1], (D_MODEL, D_MODEL))
        wv = nrm(k[2], (D_MODEL, D_MODEL))
        wqkv.append(jnp.concatenate([wq, wk, wv], axis=1))  # fused QKV (D, 3D)
        bqkv.append(jnp.zeros((1, 3 * D_MODEL), jnp.float32))
        wo.append(nrm(k[3], (D_MODEL, D_MODEL)))
        bo.append(jnp.zeros((1, D_MODEL), jnp.float32))
        ln1g.append(jnp.ones((1, D_MODEL), jnp.float32))
        ln1b.append(jnp.zeros((1, D_MODEL), jnp.float32))
        ln2g.append(jnp.ones((1, D_MODEL), jnp.float32))
        ln2b.append(jnp.zeros((1, D_MODEL), jnp.float32))
        w1.append(nrm(k[4], (D_MODEL, FFN)))
        b1.append(jnp.zeros((1, FFN), jnp.float32))
        w2.append(nrm(k[5], (FFN, D_MODEL)))
        b2.append(jnp.zeros((1, D_MODEL), jnp.float32))

    params.update({
        "ln1_g": jnp.stack(ln1g), "ln1_b": jnp.stack(ln1b),
        "wqkv": jnp.stack(wqkv), "bqkv": jnp.stack(bqkv),
        "wo": jnp.stack(wo), "bo": jnp.stack(bo),
        "ln2_g": jnp.stack(ln2g), "ln2_b": jnp.stack(ln2b),
        "w1": jnp.stack(w1), "b1": jnp.stack(b1),
        "w2": jnp.stack(w2), "b2": jnp.stack(b2),
    })
    return params


# --------------------------------- main --------------------------------------
if __name__ == "__main__":
    key = jax.random.PRNGKey(0)
    pkey, ikey = jax.random.split(key)
    params = init_params(pkey)

    input_ids = jax.random.randint(ikey, (BATCH, SEQ), 0, VOCAB - 1, dtype=jnp.int32)
    attention_mask = jnp.ones((BATCH, SEQ), dtype=jnp.int32)

    logits, masked_ids, mask_indices = diffusion_lm_forward(
        input_ids, attention_mask, t=0.35, seed=0, params=params)
    jax.block_until_ready((logits, masked_ids, mask_indices))

    assert logits.shape == (BATCH, SEQ, VOCAB) and logits.dtype == jnp.float32
    assert masked_ids.shape == (BATCH, SEQ) and masked_ids.dtype == jnp.int32
    assert mask_indices.shape == (BATCH, SEQ) and mask_indices.dtype == jnp.bool_
    # masked positions carry the mask token id; unmasked positions are unchanged
    assert bool(jnp.all(jnp.where(mask_indices,
                                  masked_ids == MASK_TOKEN_ID,
                                  masked_ids == input_ids)))
    assert bool(jnp.all(jnp.isfinite(logits)))
    print("KERNEL_OK")
</pallas_src>

<mosaic_0001>
module attributes {stable_mosaic.version = 11 : i64} {
  func.func @_fused_forward_kernel(%arg0: memref<1xi32, #tpu.memory_space<smem>>, %arg1: memref<1xf32, #tpu.memory_space<smem>>, %arg2: memref<16x1xi32, #tpu.memory_space<vmem>>, %arg3: memref<16x32xf32, #tpu.memory_space<vmem>>, %arg4: memref<16x16xf32, #tpu.memory_space<vmem>>, %arg5: memref<64x32xf32, #tpu.memory_space<vmem>>, %arg6: memref<2x1x32xf32, #tpu.memory_space<vmem>>, %arg7: memref<2x1x32xf32, #tpu.memory_space<vmem>>, %arg8: memref<2x32x96xf32, #tpu.memory_space<vmem>>, %arg9: memref<2x1x96xf32, #tpu.memory_space<vmem>>, %arg10: memref<2x32x32xf32, #tpu.memory_space<vmem>>, %arg11: memref<2x1x32xf32, #tpu.memory_space<vmem>>, %arg12: memref<2x1x32xf32, #tpu.memory_space<vmem>>, %arg13: memref<2x1x32xf32, #tpu.memory_space<vmem>>, %arg14: memref<2x32x64xf32, #tpu.memory_space<vmem>>, %arg15: memref<2x1x64xf32, #tpu.memory_space<vmem>>, %arg16: memref<2x64x32xf32, #tpu.memory_space<vmem>>, %arg17: memref<2x1x32xf32, #tpu.memory_space<vmem>>, %arg18: memref<1x32xf32, #tpu.memory_space<vmem>>, %arg19: memref<1x32xf32, #tpu.memory_space<vmem>>, %arg20: memref<32x128xf32, #tpu.memory_space<vmem>>, %arg21: memref<1x128xf32, #tpu.memory_space<vmem>>, %arg22: memref<16x128xf32, #tpu.memory_space<vmem>>, %arg23: memref<16x1xi32, #tpu.memory_space<vmem>>, %arg24: memref<16x1xi32, #tpu.memory_space<vmem>>) attributes {dimension_semantics = [], scalar_prefetch = 0 : i64, scratch_operands = 0 : i64, tpu.core_type = #tpu.core_type<tc>} {
    %c0 = arith.constant 0 : index
    %0 = memref.load %arg0[%c0] : memref<1xi32, #tpu.memory_space<smem>>
    %c0_0 = arith.constant 0 : index
    %1 = memref.load %arg1[%c0_0] : memref<1xf32, #tpu.memory_space<smem>>
    %2 = tpu.iota {dimensions = array<i32: 0>} : vector<16x1xi32>
    %c1000003_i32 = arith.constant 1000003 : i32
    %3 = vector.broadcast %c1000003_i32 : i32 to vector<16x1xi32>
    %4 = arith.muli %2, %3 : vector<16x1xi32>
    %c374761393_i32 = arith.constant 374761393 : i32
    %5 = arith.muli %0, %c374761393_i32 : i32
    %6 = vector.broadcast %5 : i32 to vector<16x1xi32>
    %7 = arith.addi %4, %6 : vector<16x1xi32>
    %c12345_i32 = arith.constant 12345 : i32
    %8 = vector.broadcast %c12345_i32 : i32 to vector<16x1xi32>
    %9 = arith.addi %7, %8 : vector<16x1xi32>
    %c2147483647_i32 = arith.constant 2147483647 : i32
    %10 = vector.broadcast %c2147483647_i32 : i32 to vector<16x1xi32>
    %11 = arith.andi %9, %10 : vector<16x1xi32>
    %c15_i32 = arith.constant 15 : i32
    %12 = vector.broadcast %c15_i32 : i32 to vector<16x1xi32>
    %13 = arith.shrsi %11, %12 : vector<16x1xi32>
    %14 = arith.xori %11, %13 : vector<16x1xi32>
    %c668265263_i32 = arith.constant 668265263 : i32
    %15 = vector.broadcast %c668265263_i32 : i32 to vector<16x1xi32>
    %16 = arith.muli %14, %15 : vector<16x1xi32>
    %c2147483647_i32_1 = arith.constant 2147483647 : i32
    %17 = vector.broadcast %c2147483647_i32_1 : i32 to vector<16x1xi32>
    %18 = arith.andi %16, %17 : vector<16x1xi32>
    %c13_i32 = arith.constant 13 : i32
    %19 = vector.broadcast %c13_i32 : i32 to vector<16x1xi32>
    %20 = arith.shrsi %18, %19 : vector<16x1xi32>
    %21 = arith.xori %18, %20 : vector<16x1xi32>
    %c1274126177_i32 = arith.constant 1274126177 : i32
    %22 = vector.broadcast %c1274126177_i32 : i32 to vector<16x1xi32>
    %23 = arith.muli %21, %22 : vector<16x1xi32>
    %c2147483647_i32_2 = arith.constant 2147483647 : i32
    %24 = vector.broadcast %c2147483647_i32_2 : i32 to vector<16x1xi32>
    %25 = arith.andi %23, %24 : vector<16x1xi32>
    %c16_i32 = arith.constant 16 : i32
    %26 = vector.broadcast %c16_i32 : i32 to vector<16x1xi32>
    %27 = arith.shrsi %25, %26 : vector<16x1xi32>
    %28 = arith.xori %25, %27 : vector<16x1xi32>
    %c1_i32 = arith.constant 1 : i32
    %29 = vector.broadcast %c1_i32 : i32 to vector<16x1xi32>
    %30 = arith.muli %28, %29 : vector<16x1xi32>
    %c2147483647_i32_3 = arith.constant 2147483647 : i32
    %31 = vector.broadcast %c2147483647_i32_3 : i32 to vector<16x1xi32>
    %32 = arith.andi %30, %31 : vector<16x1xi32>
    %c7_i32 = arith.constant 7 : i32
    %33 = vector.broadcast %c7_i32 : i32 to vector<16x1xi32>
    %34 = arith.shrsi %32, %33 : vector<16x1xi32>
    %35 = arith.sitofp %34 : vector<16x1xi32> to vector<16x1xf32>
    %cst = arith.constant 5.96046448E-8 : f32
    %36 = vector.broadcast %cst : f32 to vector<16x1xf32>
    %37 = arith.mulf %35, %36 : vector<16x1xf32>
    %38 = vector.broadcast %1 : f32 to vector<16x1xf32>
    %39 = arith.cmpf olt, %37, %38 : vector<16x1xf32>
    %c0_4 = arith.constant 0 : index
    %c0_5 = arith.constant 0 : index
    %40 = vector.load %arg2[%c0_4, %c0_5] : memref<16x1xi32, #tpu.memory_space<vmem>>, vector<16x1xi32>
    %c63_i32 = arith.constant 63 : i32
    %41 = vector.broadcast %c63_i32 : i32 to vector<16x1xi32>
    %42 = arith.select %39, %41, %40 : vector<16x1xi1>, vector<16x1xi32>
    %c0_6 = arith.constant 0 : index
    %c0_7 = arith.constant 0 : index
    %43 = vector.load %arg23[%c0_6, %c0_7] : memref<16x1xi32, #tpu.memory_space<vmem>>, vector<16x1xi32>
    tpu.vector_store %arg23[%c0_6, %c0_7], %42 {strides = array<i32>} : memref<16x1xi32, #tpu.memory_space<vmem>>, vector<16x1xi32>,
    %44 = arith.extui %39 : vector<16x1xi1> to vector<16x1xi32>
    %c0_8 = arith.constant 0 : index
    %c0_9 = arith.constant 0 : index
    %45 = vector.load %arg24[%c0_8, %c0_9] : memref<16x1xi32, #tpu.memory_space<vmem>>, vector<16x1xi32>
    tpu.vector_store %arg24[%c0_8, %c0_9], %44 {strides = array<i32>} : memref<16x1xi32, #tpu.memory_space<vmem>>, vector<16x1xi32>,
    %46 = tpu.iota {dimensions = array<i32: 1>} : vector<16x64xi32>
    %47 = vector.broadcast %42 : vector<16x1xi32> to vector<16x64xi32>
    %48 = arith.cmpi eq, %47, %46 : vector<16x64xi32>
    %49 = arith.extui %48 : vector<16x64xi1> to vector<16x64xi32>
    %50 = arith.sitofp %49 : vector<16x64xi32> to vector<16x64xf32>
    %c0_10 = arith.constant 0 : index
    %c0_11 = arith.constant 0 : index
    %51 = vector.load %arg5[%c0_10, %c0_11] : memref<64x32xf32, #tpu.memory_space<vmem>>, vector<64x32xf32>
    %cst_12 = arith.constant dense<0.000000e+00> : vector<16x32xf32>
    %52 = tpu.matmul %50, %51, %cst_12 {dimension_numbers = #tpu.dot_dimension_numbers<[1], [0], [0], [1], [0, 0, 1, 1], [], []>} : vector<16x64xf32>, vector<64x32xf32>, vector<16x32xf32> -> vector<16x32xf32>
    %c0_13 = arith.constant 0 : index
    %c0_14 = arith.constant 0 : index
    %53 = vector.load %arg3[%c0_13, %c0_14] : memref<16x32xf32, #tpu.memory_space<vmem>>, vector<16x32xf32>
    %54 = arith.addf %52, %53 : vector<16x32xf32>
    %c0_15 = arith.constant 0 : index
    %c0_16 = arith.constant 0 : index
    %55 = vector.load %arg4[%c0_15, %c0_16] : memref<16x16xf32, #tpu.memory_space<vmem>>, vector<16x16xf32>
    %c0_17 = arith.constant 0 : index
    %c0_18 = arith.constant 0 : index
    %c0_19 = arith.constant 0 : index
    %56 = vector.load %arg6[%c0_17, %c0_18, %c0_19] : memref<2x1x32xf32, #tpu.memory_space<vmem>>, vector<1x1x32xf32>
    %57 = vector.shape_cast %56 : vector<1x1x32xf32> to vector<1x32xf32>
    %c0_20 = arith.constant 0 : index
    %c0_21 = arith.constant 0 : index
    %c0_22 = arith.constant 0 : index
    %58 = vector.load %arg7[%c0_20, %c0_21, %c0_22] : memref<2x1x32xf32, #tpu.memory_space<vmem>>, vector<1x1x32xf32>
    %59 = vector.shape_cast %58 : vector<1x1x32xf32> to vector<1x32xf32>
    %cst_23 = arith.constant dense<0.000000e+00> : vector<16xf32>
    %60 = vector.multi_reduction <add>, %54, %cst_23 [1] : vector<16x32xf32> to vector<16xf32>
    %61 = vector.shape_cast %60 : vector<16xf32> to vector<16x1xf32>
    %cst_24 = arith.constant 3.200000e+01 : f32
    %62 = vector.broadcast %cst_24 : f32 to vector<16x1xf32>
    %63 = arith.divf %61, %62 : vector<16x1xf32>
    %64 = vector.broadcast %63 : vector<16x1xf32> to vector<16x32xf32>
    %65 = arith.subf %54, %64 : vector<16x32xf32>
    %66 = arith.mulf %65, %65 : vector<16x32xf32>
    %cst_25 = arith.constant dense<0.000000e+00> : vector<16xf32>
    %67 = vector.multi_reduction <add>, %66, %cst_25 [1] : vector<16x32xf32> to vector<16xf32>
    %68 = vector.shape_cast %67 : vector<16xf32> to vector<16x1xf32>
    %cst_26 = arith.constant 3.200000e+01 : f32
    %69 = vector.broadcast %cst_26 : f32 to vector<16x1xf32>
    %70 = arith.divf %68, %69 : vector<16x1xf32>
    %71 = vector.broadcast %63 : vector<16x1xf32> to vector<16x32xf32>
    %72 = arith.subf %54, %71 : vector<16x32xf32>
    %cst_27 = arith.constant 9.99999974E-6 : f32
    %73 = vector.broadcast %cst_27 : f32 to vector<16x1xf32>
    %74 = arith.addf %70, %73 : vector<16x1xf32>
    %75 = math.rsqrt %74 : vector<16x1xf32>
    %76 = vector.broadcast %75 : vector<16x1xf32> to vector<16x32xf32>
    %77 = arith.mulf %72, %76 : vector<16x32xf32>
    %78 = vector.broadcast %57 : vector<1x32xf32> to vector<16x32xf32>
    %79 = arith.mulf %77, %78 : vector<16x32xf32>
    %80 = vector.broadcast %59 : vector<1x32xf32> to vector<16x32xf32>
    %81 = arith.addf %79, %80 : vector<16x32xf32>
    %c0_28 = arith.constant 0 : index
    %c0_29 = arith.constant 0 : index
    %c0_30 = arith.constant 0 : index
    %82 = vector.load %arg8[%c0_28, %c0_29, %c0_30] : memref<2x32x96xf32, #tpu.memory_space<vmem>>, vector<1x32x96xf32>
    %83 = vector.shape_cast %82 : vector<1x32x96xf32> to vector<32x96xf32>
    %cst_31 = arith.constant dense<0.000000e+00> : vector<16x96xf32>
    %84 = tpu.matmul %81, %83, %cst_31 {dimension_numbers = #tpu.dot_dimension_numbers<[1], [0], [0], [1], [0, 0, 1, 1], [], []>} : vector<16x32xf32>, vector<32x96xf32>, vector<16x96xf32> -> vector<16x96xf32>
    %c0_32 = arith.constant 0 : index
    %c0_33 = arith.constant 0 : index
    %c0_34 = arith.constant 0 : index
    %85 = vector.load %arg9[%c0_32, %c0_33, %c0_34] : memref<2x1x96xf32, #tpu.memory_space<vmem>>, vector<1x1x96xf32>
    %86 = vector.shape_cast %85 : vector<1x1x96xf32> to vector<1x96xf32>
    %87 = vector.broadcast %86 : vector<1x96xf32> to vector<16x96xf32>
    %88 = arith.addf %84, %87 : vector<16x96xf32>
    %89 = vector.extract_strided_slice %88 {offsets = [0, 0], sizes = [16, 16], strides = [1, 1]} : vector<16x96xf32> to vector<16x16xf32>
    %90 = vector.extract_strided_slice %88 {offsets = [0, 32], sizes = [16, 16], strides = [1, 1]} : vector<16x96xf32> to vector<16x16xf32>
    %91 = vector.extract_strided_slice %88 {offsets = [0, 64], sizes = [16, 16], strides = [1, 1]} : vector<16x96xf32> to vector<16x16xf32>
    %cst_35 = arith.constant dense<0.000000e+00> : vector<16x16xf32>
    %92 = tpu.matmul %89, %90, %cst_35 {dimension_numbers = #tpu.dot_dimension_numbers<[1], [1], [0], [0], [0, 0, 1, 0], [], []>} : vector<16x16xf32>, vector<16x16xf32>, vector<16x16xf32> -> vector<16x16xf32>
    %93 = arith.addf %92, %55 : vector<16x16xf32>
    %cst_36 = arith.constant dense<0xFF800000> : vector<16xf32>
    %94 = vector.multi_reduction <maximumf>, %93, %cst_36 [1] : vector<16x16xf32> to vector<16xf32>
    %95 = vector.shape_cast %94 : vector<16xf32> to vector<16x1xf32>
    %96 = vector.broadcast %95 : vector<16x1xf32> to vector<16x16xf32>
    %97 = arith.subf %93, %96 : vector<16x16xf32>
    %98 = math.exp %97 : vector<16x16xf32>
    %cst_37 = arith.constant dense<0.000000e+00> : vector<16xf32>
    %99 = vector.multi_reduction <add>, %98, %cst_37 [1] : vector<16x16xf32> to vector<16xf32>
    %100 = vector.shape_cast %99 : vector<16xf32> to vector<16x1xf32>
    %101 = vector.broadcast %100 : vector<16x1xf32> to vector<16x16xf32>
    %102 = arith.divf %98, %101 : vector<16x16xf32>
    %cst_38 = arith.constant dense<0.000000e+00> : vector<16x16xf32>
    %103 = tpu.matmul %102, %91, %cst_38 {dimension_numbers = #tpu.dot_dimension_numbers<[1], [0], [0], [1], [0, 0, 1, 1], [], []>} : vector<16x16xf32>, vector<16x16xf32>, vector<16x16xf32> -> vector<16x16xf32>
    %104 = vector.extract_strided_slice %88 {offsets = [0, 16], sizes = [16, 16], strides = [1, 1]} : vector<16x96xf32> to vector<16x16xf32>
    %105 = vector.extract_strided_slice %88 {offsets = [0, 48], sizes = [16, 16], strides = [1, 1]} : vector<16x96xf32> to vector<16x16xf32>
    %106 = vector.extract_strided_slice %88 {offsets = [0, 80], sizes = [16, 16], strides = [1, 1]} : vector<16x96xf32> to vector<16x16xf32>
    %cst_39 = arith.constant dense<0.000000e+00> : vector<16x16xf32>
    %107 = tpu.matmul %104, %105, %cst_39 {dimension_numbers = #tpu.dot_dimension_numbers<[1], [1], [0], [0], [0, 0, 1, 0], [], []>} : vector<16x16xf32>, vector<16x16xf32>, vector<16x16xf32> -> vector<16x16xf32>
    %108 = arith.addf %107, %55 : vector<16x16xf32>
    %cst_40 = arith.constant dense<0xFF800000> : vector<16xf32>
    %109 = vector.multi_reduction <maximumf>, %108, %cst_40 [1] : vector<16x16xf32> to vector<16xf32>
    %110 = vector.shape_cast %109 : vector<16xf32> to vector<16x1xf32>
    %111 = vector.broadcast %110 : vector<16x1xf32> to vector<16x16xf32>
    %112 = arith.subf %108, %111 : vector<16x16xf32>
    %113 = math.exp %112 : vector<16x16xf32>
    %cst_41 = arith.constant dense<0.000000e+00> : vector<16xf32>
    %114 = vector.multi_reduction <add>, %113, %cst_41 [1] : vector<16x16xf32> to vector<16xf32>
    %115 = vector.shape_cast %114 : vector<16xf32> to vector<16x1xf32>
    %116 = vector.broadcast %115 : vector<16x1xf32> to vector<16x16xf32>
    %117 = arith.divf %113, %116 : vector<16x16xf32>
    %cst_42 = arith.constant dense<0.000000e+00> : vector<16x16xf32>
    %118 = tpu.matmul %117, %106, %cst_42 {dimension_numbers = #tpu.dot_dimension_numbers<[1], [0], [0], [1], [0, 0, 1, 1], [], []>} : vector<16x16xf32>, vector<16x16xf32>, vector<16x16xf32> -> vector<16x16xf32>
    %119 = tpu.concatenate %103, %118 in 1 : vector<16x16xf32>, vector<16x16xf32> -> vector<16x32xf32>
    %c0_43 = arith.constant 0 : index
    %c0_44 = arith.constant 0 : index
    %c0_45 = arith.constant 0 : index
    %120 = vector.load %arg10[%c0_43, %c0_44, %c0_45] : memref<2x32x32xf32, #tpu.memory_space<vmem>>, vector<1x32x32xf32>
    %121 = vector.shape_cast %120 : vector<1x32x32xf32> to vector<32x32xf32>
    %cst_46 = arith.constant dense<0.000000e+00> : vector<16x32xf32>
    %122 = tpu.matmul %119, %121, %cst_46 {dimension_numbers = #tpu.dot_dimension_numbers<[1], [0], [0], [1], [0, 0, 1, 1], [], []>} : vector<16x32xf32>, vector<32x32xf32>, vector<16x32xf32> -> vector<16x32xf32>
    %c0_47 = arith.constant 0 : index
    %c0_48 = arith.constant 0 : index
    %c0_49 = arith.constant 0 : index
    %123 = vector.load %arg11[%c0_47, %c0_48, %c0_49] : memref<2x1x32xf32, #tpu.memory_space<vmem>>, vector<1x1x32xf32>
    %124 = vector.shape_cast %123 : vector<1x1x32xf32> to vector<1x32xf32>
    %125 = vector.broadcast %124 : vector<1x32xf32> to vector<16x32xf32>
    %126 = arith.addf %122, %125 : vector<16x32xf32>
    %127 = arith.addf %54, %126 : vector<16x32xf32>
    %c0_50 = arith.constant 0 : index
    %c0_51 = arith.constant 0 : index
    %c0_52 = arith.constant 0 : index
    %128 = vector.load %arg12[%c0_50, %c0_51, %c0_52] : memref<2x1x32xf32, #tpu.memory_space<vmem>>, vector<1x1x32xf32>
    %129 = vector.shape_cast %128 : vector<1x1x32xf32> to vector<1x32xf32>
    %c0_53 = arith.constant 0 : index
    %c0_54 = arith.constant 0 : index
    %c0_55 = arith.constant 0 : index
    %130 = vector.load %arg13[%c0_53, %c0_54, %c0_55] : memref<2x1x32xf32, #tpu.memory_space<vmem>>, vector<1x1x32xf32>
    %131 = vector.shape_cast %130 : vector<1x1x32xf32> to vector<1x32xf32>
    %cst_56 = arith.constant dense<0.000000e+00> : vector<16xf32>
    %132 = vector.multi_reduction <add>, %127, %cst_56 [1] : vector<16x32xf32> to vector<16xf32>
    %133 = vector.shape_cast %132 : vector<16xf32> to vector<16x1xf32>
    %cst_57 = arith.constant 3.200000e+01 : f32
    %134 = vector.broadcast %cst_57 : f32 to vector<16x1xf32>
    %135 = arith.divf %133, %134 : vector<16x1xf32>
    %136 = vector.broadcast %135 : vector<16x1xf32> to vector<16x32xf32>
    %137 = arith.subf %127, %136 : vector<16x32xf32>
    %138 = arith.mulf %137, %137 : vector<16x32xf32>
    %cst_58 = arith.constant dense<0.000000e+00> : vector<16xf32>
    %139 = vector.multi_reduction <add>, %138, %cst_58 [1] : vector<16x32xf32> to vector<16xf32>
    %140 = vector.shape_cast %139 : vector<16xf32> to vector<16x1xf32>
    %cst_59 = arith.constant 3.200000e+01 : f32
    %141 = vector.broadcast %cst_59 : f32 to vector<16x1xf32>
    %142 = arith.divf %140, %141 : vector<16x1xf32>
    %143 = vector.broadcast %135 : vector<16x1xf32> to vector<16x32xf32>
    %144 = arith.subf %127, %143 : vector<16x32xf32>
    %cst_60 = arith.constant 9.99999974E-6 : f32
    %145 = vector.broadcast %cst_60 : f32 to vector<16x1xf32>
    %146 = arith.addf %142, %145 : vector<16x1xf32>
    %147 = math.rsqrt %146 : vector<16x1xf32>
    %148 = vector.broadcast %147 : vector<16x1xf32> to vector<16x32xf32>
    %149 = arith.mulf %144, %148 : vector<16x32xf32>
    %150 = vector.broadcast %129 : vector<1x32xf32> to vector<16x32xf32>
    %151 = arith.mulf %149, %150 : vector<16x32xf32>
    %152 = vector.broadcast %131 : vector<1x32xf32> to vector<16x32xf32>
    %153 = arith.addf %151, %152 : vector<16x32xf32>
    %c0_61 = arith.constant 0 : index
    %c0_62 = arith.constant 0 : index
    %c0_63 = arith.constant 0 : index
    %154 = vector.load %arg14[%c0_61, %c0_62, %c0_63] : memref<2x32x64xf32, #tpu.memory_space<vmem>>, vector<1x32x64xf32>
    %155 = vector.shape_cast %154 : vector<1x32x64xf32> to vector<32x64xf32>
    %cst_64 = arith.constant dense<0.000000e+00> : vector<16x64xf32>
    %156 = tpu.matmul %153, %155, %cst_64 {dimension_numbers = #tpu.dot_dimension_numbers<[1], [0], [0], [1], [0, 0, 1, 1], [], []>} : vector<16x32xf32>, vector<32x64xf32>, vector<16x64xf32> -> vector<16x64xf32>
    %c0_65 = arith.constant 0 : index
    %c0_66 = arith.constant 0 : index
    %c0_67 = arith.constant 0 : index
    %157 = vector.load %arg15[%c0_65, %c0_66, %c0_67] : memref<2x1x64xf32, #tpu.memory_space<vmem>>, vector<1x1x64xf32>
    %158 = vector.shape_cast %157 : vector<1x1x64xf32> to vector<1x64xf32>
    %159 = vector.broadcast %158 : vector<1x64xf32> to vector<16x64xf32>
    %160 = arith.addf %156, %159 : vector<16x64xf32>
    %cst_68 = arith.constant 5.000000e-01 : f32
    %161 = vector.broadcast %cst_68 : f32 to vector<16x64xf32>
    %162 = arith.mulf %161, %160 : vector<16x64xf32>
    %cst_69 = arith.constant 4.471500e-02 : f32
    %163 = vector.broadcast %cst_69 : f32 to vector<16x64xf32>
    %164 = arith.mulf %163, %160 : vector<16x64xf32>
    %165 = arith.mulf %164, %160 : vector<16x64xf32>
    %166 = arith.mulf %165, %160 : vector<16x64xf32>
    %167 = arith.addf %160, %166 : vector<16x64xf32>
    %cst_70 = arith.constant 0.797884583 : f32
    %168 = vector.broadcast %cst_70 : f32 to vector<16x64xf32>
    %169 = arith.mulf %168, %167 : vector<16x64xf32>
    %170 = math.tanh %169 : vector<16x64xf32>
    %cst_71 = arith.constant 1.000000e+00 : f32
    %171 = vector.broadcast %cst_71 : f32 to vector<16x64xf32>
    %172 = arith.addf %171, %170 : vector<16x64xf32>
    %173 = arith.mulf %162, %172 : vector<16x64xf32>
    %c0_72 = arith.constant 0 : index
    %c0_73 = arith.constant 0 : index
    %c0_74 = arith.constant 0 : index
    %174 = vector.load %arg16[%c0_72, %c0_73, %c0_74] : memref<2x64x32xf32, #tpu.memory_space<vmem>>, vector<1x64x32xf32>
    %175 = vector.shape_cast %174 : vector<1x64x32xf32> to vector<64x32xf32>
    %cst_75 = arith.constant dense<0.000000e+00> : vector<16x32xf32>
    %176 = tpu.matmul %173, %175, %cst_75 {dimension_numbers = #tpu.dot_dimension_numbers<[1], [0], [0], [1], [0, 0, 1, 1], [], []>} : vector<16x64xf32>, vector<64x32xf32>, vector<16x32xf32> -> vector<16x32xf32>
    %c0_76 = arith.constant 0 : index
    %c0_77 = arith.constant 0 : index
    %c0_78 = arith.constant 0 : index
    %177 = vector.load %arg17[%c0_76, %c0_77, %c0_78] : memref<2x1x32xf32, #tpu.memory_space<vmem>>, vector<1x1x32xf32>
    %178 = vector.shape_cast %177 : vector<1x1x32xf32> to vector<1x32xf32>
    %179 = vector.broadcast %178 : vector<1x32xf32> to vector<16x32xf32>
    %180 = arith.addf %176, %179 : vector<16x32xf32>
    %181 = arith.addf %127, %180 : vector<16x32xf32>
    %c1 = arith.constant 1 : index
    %c0_79 = arith.constant 0 : index
    %c0_80 = arith.constant 0 : index
    %182 = vector.load %arg6[%c1, %c0_79, %c0_80] : memref<2x1x32xf32, #tpu.memory_space<vmem>>, vector<1x1x32xf32>
    %183 = vector.shape_cast %182 : vector<1x1x32xf32> to vector<1x32xf32>
    %c1_81 = arith.constant 1 : index
    %c0_82 = arith.constant 0 : index
    %c0_83 = arith.constant 0 : index
    %184 = vector.load %arg7[%c1_81, %c0_82, %c0_83] : memref<2x1x32xf32, #tpu.memory_space<vmem>>, vector<1x1x32xf32>
    %185 = vector.shape_cast %184 : vector<1x1x32xf32> to vector<1x32xf32>
    %cst_84 = arith.constant dense<0.000000e+00> : vector<16xf32>
    %186 = vector.multi_reduction <add>, %181, %cst_84 [1] : vector<16x32xf32> to vector<16xf32>
    %187 = vector.shape_cast %186 : vector<16xf32> to vector<16x1xf32>
    %cst_85 = arith.constant 3.200000e+01 : f32
    %188 = vector.broadcast %cst_85 : f32 to vector<16x1xf32>
    %189 = arith.divf %187, %188 : vector<16x1xf32>
    %190 = vector.broadcast %189 : vector<16x1xf32> to vector<16x32xf32>
    %191 = arith.subf %181, %190 : vector<16x32xf32>
    %192 = arith.mulf %191, %191 : vector<16x32xf32>
    %cst_86 = arith.constant dense<0.000000e+00> : vector<16xf32>
    %193 = vector.multi_reduction <add>, %192, %cst_86 [1] : vector<16x32xf32> to vector<16xf32>
    %194 = vector.shape_cast %193 : vector<16xf32> to vector<16x1xf32>
    %cst_87 = arith.constant 3.200000e+01 : f32
    %195 = vector.broadcast %cst_87 : f32 to vector<16x1xf32>
    %196 = arith.divf %194, %195 : vector<16x1xf32>
    %197 = vector.broadcast %189 : vector<16x1xf32> to vector<16x32xf32>
    %198 = arith.subf %181, %197 : vector<16x32xf32>
    %cst_88 = arith.constant 9.99999974E-6 : f32
    %199 = vector.broadcast %cst_88 : f32 to vector<16x1xf32>
    %200 = arith.addf %196, %199 : vector<16x1xf32>
    %201 = math.rsqrt %200 : vector<16x1xf32>
    %202 = vector.broadcast %201 : vector<16x1xf32> to vector<16x32xf32>
    %203 = arith.mulf %198, %202 : vector<16x32xf32>
    %204 = vector.broadcast %183 : vector<1x32xf32> to vector<16x32xf32>
    %205 = arith.mulf %203, %204 : vector<16x32xf32>
    %206 = vector.broadcast %185 : vector<1x32xf32> to vector<16x32xf32>
    %207 = arith.addf %205, %206 : vector<16x32xf32>
    %c1_89 = arith.constant 1 : index
    %c0_90 = arith.constant 0 : index
    %c0_91 = arith.constant 0 : index
    %208 = vector.load %arg8[%c1_89, %c0_90, %c0_91] : memref<2x32x96xf32, #tpu.memory_space<vmem>>, vector<1x32x96xf32>
    %209 = vector.shape_cast %208 : vector<1x32x96xf32> to vector<32x96xf32>
    %cst_92 = arith.constant dense<0.000000e+00> : vector<16x96xf32>
    %210 = tpu.matmul %207, %209, %cst_92 {dimension_numbers = #tpu.dot_dimension_numbers<[1], [0], [0], [1], [0, 0, 1, 1], [], []>} : vector<16x32xf32>, vector<32x96xf32>, vector<16x96xf32> -> vector<16x96xf32>
    %c1_93 = arith.constant 1 : index
    %c0_94 = arith.constant 0 : index
    %c0_95 = arith.constant 0 : index
    %211 = vector.load %arg9[%c1_93, %c0_94, %c0_95] : memref<2x1x96xf32, #tpu.memory_space<vmem>>, vector<1x1x96xf32>
    %212 = vector.shape_cast %211 : vector<1x1x96xf32> to vector<1x96xf32>
    %213 = vector.broadcast %212 : vector<1x96xf32> to vector<16x96xf32>
    %214 = arith.addf %210, %213 : vector<16x96xf32>
    %215 = vector.extract_strided_slice %214 {offsets = [0, 0], sizes = [16, 16], strides = [1, 1]} : vector<16x96xf32> to vector<16x16xf32>
    %216 = vector.extract_strided_slice %214 {offsets = [0, 32], sizes = [16, 16], strides = [1, 1]} : vector<16x96xf32> to vector<16x16xf32>
    %217 = vector.extract_strided_slice %214 {offsets = [0, 64], sizes = [16, 16], strides = [1, 1]} : vector<16x96xf32> to vector<16x16xf32>
    %cst_96 = arith.constant dense<0.000000e+00> : vector<16x16xf32>
    %218 = tpu.matmul %215, %216, %cst_96 {dimension_numbers = #tpu.dot_dimension_numbers<[1], [1], [0], [0], [0, 0, 1, 0], [], []>} : vector<16x16xf32>, vector<16x16xf32>, vector<16x16xf32> -> vector<16x16xf32>
    %219 = arith.addf %218, %55 : vector<16x16xf32>
    %cst_97 = arith.constant dense<0xFF800000> : vector<16xf32>
    %220 = vector.multi_reduction <maximumf>, %219, %cst_97 [1] : vector<16x16xf32> to vector<16xf32>
    %221 = vector.shape_cast %220 : vector<16xf32> to vector<16x1xf32>
    %222 = vector.broadcast %221 : vector<16x1xf32> to vector<16x16xf32>
    %223 = arith.subf %219, %222 : vector<16x16xf32>
    %224 = math.exp %223 : vector<16x16xf32>
    %cst_98 = arith.constant dense<0.000000e+00> : vector<16xf32>
    %225 = vector.multi_reduction <add>, %224, %cst_98 [1] : vector<16x16xf32> to vector<16xf32>
    %226 = vector.shape_cast %225 : vector<16xf32> to vector<16x1xf32>
    %227 = vector.broadcast %226 : vector<16x1xf32> to vector<16x16xf32>
    %228 = arith.divf %224, %227 : vector<16x16xf32>
    %cst_99 = arith.constant dense<0.000000e+00> : vector<16x16xf32>
    %229 = tpu.matmul %228, %217, %cst_99 {dimension_numbers = #tpu.dot_dimension_numbers<[1], [0], [0], [1], [0, 0, 1, 1], [], []>} : vector<16x16xf32>, vector<16x16xf32>, vector<16x16xf32> -> vector<16x16xf32>
    %230 = vector.extract_strided_slice %214 {offsets = [0, 16], sizes = [16, 16], strides = [1, 1]} : vector<16x96xf32> to vector<16x16xf32>
    %231 = vector.extract_strided_slice %214 {offsets = [0, 48], sizes = [16, 16], strides = [1, 1]} : vector<16x96xf32> to vector<16x16xf32>
    %232 = vector.extract_strided_slice %214 {offsets = [0, 80], sizes = [16, 16], strides = [1, 1]} : vector<16x96xf32> to vector<16x16xf32>
    %cst_100 = arith.constant dense<0.000000e+00> : vector<16x16xf32>
    %233 = tpu.matmul %230, %231, %cst_100 {dimension_numbers = #tpu.dot_dimension_numbers<[1], [1], [0], [0], [0, 0, 1, 0], [], []>} : vector<16x16xf32>, vector<16x16xf32>, vector<16x16xf32> -> vector<16x16xf32>
    %234 = arith.addf %233, %55 : vector<16x16xf32>
    %cst_101 = arith.constant dense<0xFF800000> : vector<16xf32>
    %235 = vector.multi_reduction <maximumf>, %234, %cst_101 [1] : vector<16x16xf32> to vector<16xf32>
    %236 = vector.shape_cast %235 : vector<16xf32> to vector<16x1xf32>
    %237 = vector.broadcast %236 : vector<16x1xf32> to vector<16x16xf32>
    %238 = arith.subf %234, %237 : vector<16x16xf32>
    %239 = math.exp %238 : vector<16x16xf32>
    %cst_102 = arith.constant dense<0.000000e+00> : vector<16xf32>
    %240 = vector.multi_reduction <add>, %239, %cst_102 [1] : vector<16x16xf32> to vector<16xf32>
    %241 = vector.shape_cast %240 : vector<16xf32> to vector<16x1xf32>
    %242 = vector.broadcast %241 : vector<16x1xf32> to vector<16x16xf32>
    %243 = arith.divf %239, %242 : vector<16x16xf32>
    %cst_103 = arith.constant dense<0.000000e+00> : vector<16x16xf32>
    %244 = tpu.matmul %243, %232, %cst_103 {dimension_numbers = #tpu.dot_dimension_numbers<[1], [0], [0], [1], [0, 0, 1, 1], [], []>} : vector<16x16xf32>, vector<16x16xf32>, vector<16x16xf32> -> vector<16x16xf32>
    %245 = tpu.concatenate %229, %244 in 1 : vector<16x16xf32>, vector<16x16xf32> -> vector<16x32xf32>
    %c1_104 = arith.constant 1 : index
    %c0_105 = arith.constant 0 : index
    %c0_106 = arith.constant 0 : index
    %246 = vector.load %arg10[%c1_104, %c0_105, %c0_106] : memref<2x32x32xf32, #tpu.memory_space<vmem>>, vector<1x32x32xf32>
    %247 = vector.shape_cast %246 : vector<1x32x32xf32> to vector<32x32xf32>
    %cst_107 = arith.constant dense<0.000000e+00> : vector<16x32xf32>
    %248 = tpu.matmul %245, %247, %cst_107 {dimension_numbers = #tpu.dot_dimension_numbers<[1], [0], [0], [1], [0, 0, 1, 1], [], []>} : vector<16x32xf32>, vector<32x32xf32>, vector<16x32xf32> -> vector<16x32xf32>
    %c1_108 = arith.constant 1 : index
    %c0_109 = arith.constant 0 : index
    %c0_110 = arith.constant 0 : index
    %249 = vector.load %arg11[%c1_108, %c0_109, %c0_110] : memref<2x1x32xf32, #tpu.memory_space<vmem>>, vector<1x1x32xf32>
    %250 = vector.shape_cast %249 : vector<1x1x32xf32> to vector<1x32xf32>
    %251 = vector.broadcast %250 : vector<1x32xf32> to vector<16x32xf32>
    %252 = arith.addf %248, %251 : vector<16x32xf32>
    %253 = arith.addf %181, %252 : vector<16x32xf32>
    %c1_111 = arith.constant 1 : index
    %c0_112 = arith.constant 0 : index
    %c0_113 = arith.constant 0 : index
    %254 = vector.load %arg12[%c1_111, %c0_112, %c0_113] : memref<2x1x32xf32, #tpu.memory_space<vmem>>, vector<1x1x32xf32>
    %255 = vector.shape_cast %254 : vector<1x1x32xf32> to vector<1x32xf32>
    %c1_114 = arith.constant 1 : index
    %c0_115 = arith.constant 0 : index
    %c0_116 = arith.constant 0 : index
    %256 = vector.load %arg13[%c1_114, %c0_115, %c0_116] : memref<2x1x32xf32, #tpu.memory_space<vmem>>, vector<1x1x32xf32>
    %257 = vector.shape_cast %256 : vector<1x1x32xf32> to vector<1x32xf32>
    %cst_117 = arith.constant dense<0.000000e+00> : vector<16xf32>
    %258 = vector.multi_reduction <add>, %253, %cst_117 [1] : vector<16x32xf32> to vector<16xf32>
    %259 = vector.shape_cast %258 : vector<16xf32> to vector<16x1xf32>
    %cst_118 = arith.constant 3.200000e+01 : f32
    %260 = vector.broadcast %cst_118 : f32 to vector<16x1xf32>
    %261 = arith.divf %259, %260 : vector<16x1xf32>
    %262 = vector.broadcast %261 : vector<16x1xf32> to vector<16x32xf32>
    %263 = arith.subf %253, %262 : vector<16x32xf32>
    %264 = arith.mulf %263, %263 : vector<16x32xf32>
    %cst_119 = arith.constant dense<0.000000e+00> : vector<16xf32>
    %265 = vector.multi_reduction <add>, %264, %cst_119 [1] : vector<16x32xf32> to vector<16xf32>
    %266 = vector.shape_cast %265 : vector<16xf32> to vector<16x1xf32>
    %cst_120 = arith.constant 3.200000e+01 : f32
    %267 = vector.broadcast %cst_120 : f32 to vector<16x1xf32>
    %268 = arith.divf %266, %267 : vector<16x1xf32>
    %269 = vector.broadcast %261 : vector<16x1xf32> to vector<16x32xf32>
    %270 = arith.subf %253, %269 : vector<16x32xf32>
    %cst_121 = arith.constant 9.99999974E-6 : f32
    %271 = vector.broadcast %cst_121 : f32 to vector<16x1xf32>
    %272 = arith.addf %268, %271 : vector<16x1xf32>
    %273 = math.rsqrt %272 : vector<16x1xf32>
    %274 = vector.broadcast %273 : vector<16x1xf32> to vector<16x32xf32>
    %275 = arith.mulf %270, %274 : vector<16x32xf32>
    %276 = vector.broadcast %255 : vector<1x32xf32> to vector<16x32xf32>
    %277 = arith.mulf %275, %276 : vector<16x32xf32>
    %278 = vector.broadcast %257 : vector<1x32xf32> to vector<16x32xf32>
    %279 = arith.addf %277, %278 : vector<16x32xf32>
    %c1_122 = arith.constant 1 : index
    %c0_123 = arith.constant 0 : index
    %c0_124 = arith.constant 0 : index
    %280 = vector.load %arg14[%c1_122, %c0_123, %c0_124] : memref<2x32x64xf32, #tpu.memory_space<vmem>>, vector<1x32x64xf32>
    %281 = vector.shape_cast %280 : vector<1x32x64xf32> to vector<32x64xf32>
    %cst_125 = arith.constant dense<0.000000e+00> : vector<16x64xf32>
    %282 = tpu.matmul %279, %281, %cst_125 {dimension_numbers = #tpu.dot_dimension_numbers<[1], [0], [0], [1], [0, 0, 1, 1], [], []>} : vector<16x32xf32>, vector<32x64xf32>, vector<16x64xf32> -> vector<16x64xf32>
    %c1_126 = arith.constant 1 : index
    %c0_127 = arith.constant 0 : index
    %c0_128 = arith.constant 0 : index
    %283 = vector.load %arg15[%c1_126, %c0_127, %c0_128] : memref<2x1x64xf32, #tpu.memory_space<vmem>>, vector<1x1x64xf32>
    %284 = vector.shape_cast %283 : vector<1x1x64xf32> to vector<1x64xf32>
    %285 = vector.broadcast %284 : vector<1x64xf32> to vector<16x64xf32>
    %286 = arith.addf %282, %285 : vector<16x64xf32>
    %cst_129 = arith.constant 5.000000e-01 : f32
    %287 = vector.broadcast %cst_129 : f32 to vector<16x64xf32>
    %288 = arith.mulf %287, %286 : vector<16x64xf32>
    %cst_130 = arith.constant 4.471500e-02 : f32
    %289 = vector.broadcast %cst_130 : f32 to vector<16x64xf32>
    %290 = arith.mulf %289, %286 : vector<16x64xf32>
    %291 = arith.mulf %290, %286 : vector<16x64xf32>
    %292 = arith.mulf %291, %286 : vector<16x64xf32>
    %293 = arith.addf %286, %292 : vector<16x64xf32>
    %cst_131 = arith.constant 0.797884583 : f32
    %294 = vector.broadcast %cst_131 : f32 to vector<16x64xf32>
    %295 = arith.mulf %294, %293 : vector<16x64xf32>
    %296 = math.tanh %295 : vector<16x64xf32>
    %cst_132 = arith.constant 1.000000e+00 : f32
    %297 = vector.broadcast %cst_132 : f32 to vector<16x64xf32>
    %298 = arith.addf %297, %296 : vector<16x64xf32>
    %299 = arith.mulf %288, %298 : vector<16x64xf32>
    %c1_133 = arith.constant 1 : index
    %c0_134 = arith.constant 0 : index
    %c0_135 = arith.constant 0 : index
    %300 = vector.load %arg16[%c1_133, %c0_134, %c0_135] : memref<2x64x32xf32, #tpu.memory_space<vmem>>, vector<1x64x32xf32>
    %301 = vector.shape_cast %300 : vector<1x64x32xf32> to vector<64x32xf32>
    %cst_136 = arith.constant dense<0.000000e+00> : vector<16x32xf32>
    %302 = tpu.matmul %299, %301, %cst_136 {dimension_numbers = #tpu.dot_dimension_numbers<[1], [0], [0], [1], [0, 0, 1, 1], [], []>} : vector<16x64xf32>, vector<64x32xf32>, vector<16x32xf32> -> vector<16x32xf32>
    %c1_137 = arith.constant 1 : index
    %c0_138 = arith.constant 0 : index
    %c0_139 = arith.constant 0 : index
    %303 = vector.load %arg17[%c1_137, %c0_138, %c0_139] : memref<2x1x32xf32, #tpu.memory_space<vmem>>, vector<1x1x32xf32>
    %304 = vector.shape_cast %303 : vector<1x1x32xf32> to vector<1x32xf32>
    %305 = vector.broadcast %304 : vector<1x32xf32> to vector<16x32xf32>
    %306 = arith.addf %302, %305 : vector<16x32xf32>
    %307 = arith.addf %253, %306 : vector<16x32xf32>
    %c0_140 = arith.constant 0 : index
    %c0_141 = arith.constant 0 : index
    %308 = vector.load %arg18[%c0_140, %c0_141] : memref<1x32xf32, #tpu.memory_space<vmem>>, vector<1x32xf32>
    %c0_142 = arith.constant 0 : index
    %c0_143 = arith.constant 0 : index
    %309 = vector.load %arg19[%c0_142, %c0_143] : memref<1x32xf32, #tpu.memory_space<vmem>>, vector<1x32xf32>
    %cst_144 = arith.constant dense<0.000000e+00> : vector<16xf32>
    %310 = vector.multi_reduction <add>, %307, %cst_144 [1] : vector<16x32xf32> to vector<16xf32>
    %311 = vector.shape_cast %310 : vector<16xf32> to vector<16x1xf32>
    %cst_145 = arith.constant 3.200000e+01 : f32
    %312 = vector.broadcast %cst_145 : f32 to vector<16x1xf32>
    %313 = arith.divf %311, %312 : vector<16x1xf32>
    %314 = vector.broadcast %313 : vector<16x1xf32> to vector<16x32xf32>
    %315 = arith.subf %307, %314 : vector<16x32xf32>
    %316 = arith.mulf %315, %315 : vector<16x32xf32>
    %cst_146 = arith.constant dense<0.000000e+00> : vector<16xf32>
    %317 = vector.multi_reduction <add>, %316, %cst_146 [1] : vector<16x32xf32> to vector<16xf32>
    %318 = vector.shape_cast %317 : vector<16xf32> to vector<16x1xf32>
    %cst_147 = arith.constant 3.200000e+01 : f32
    %319 = vector.broadcast %cst_147 : f32 to vector<16x1xf32>
    %320 = arith.divf %318, %319 : vector<16x1xf32>
    %321 = vector.broadcast %313 : vector<16x1xf32> to vector<16x32xf32>
    %322 = arith.subf %307, %321 : vector<16x32xf32>
    %cst_148 = arith.constant 9.99999974E-6 : f32
    %323 = vector.broadcast %cst_148 : f32 to vector<16x1xf32>
    %324 = arith.addf %320, %323 : vector<16x1xf32>
    %325 = math.rsqrt %324 : vector<16x1xf32>
    %326 = vector.broadcast %325 : vector<16x1xf32> to vector<16x32xf32>
    %327 = arith.mulf %322, %326 : vector<16x32xf32>
    %328 = vector.broadcast %308 : vector<1x32xf32> to vector<16x32xf32>
    %329 = arith.mulf %327, %328 : vector<16x32xf32>
    %330 = vector.broadcast %309 : vector<1x32xf32> to vector<16x32xf32>
    %331 = arith.addf %329, %330 : vector<16x32xf32>
    %c0_149 = arith.constant 0 : index
    %c0_150 = arith.constant 0 : index
    %332 = vector.load %arg20[%c0_149, %c0_150] : memref<32x128xf32, #tpu.memory_space<vmem>>, vector<32x128xf32>
    %cst_151 = arith.constant dense<0.000000e+00> : vector<16x128xf32>
    %333 = tpu.matmul %331, %332, %cst_151 {dimension_numbers = #tpu.dot_dimension_numbers<[1], [0], [0], [1], [0, 0, 1, 1], [], []>} : vector<16x32xf32>, vector<32x128xf32>, vector<16x128xf32> -> vector<16x128xf32>
    %c0_152 = arith.constant 0 : index
    %c0_153 = arith.constant 0 : index
    %334 = vector.load %arg21[%c0_152, %c0_153] : memref<1x128xf32, #tpu.memory_space<vmem>>, vector<1x128xf32>
    %335 = vector.broadcast %334 : vector<1x128xf32> to vector<16x128xf32>
    %336 = arith.addf %333, %335 : vector<16x128xf32>
    %c0_154 = arith.constant 0 : index
    %c0_155 = arith.constant 0 : index
    %337 = vector.load %arg22[%c0_154, %c0_155] : memref<16x128xf32, #tpu.memory_space<vmem>>, vector<16x128xf32>
    tpu.vector_store %arg22[%c0_154, %c0_155], %336 {strides = array<i32>} : memref<16x128xf32, #tpu.memory_space<vmem>>, vector<16x128xf32>,
    return
  }
}

</mosaic_0001>

<bundles_post_ra>
// kernel: _forward_jit.1
= control target key start
LH: loop header
LB: loop body
LE: loop exit
PB: predicated region body
PF: predicated region fallthrough
CT: control target
= control target key end

     0   :  { %v78_v0 = vlaneseq  ;;  %v2826_v1 = vmov 0   ;;  %vm126_vm0 = vcmask 7168   ;;  %vm157_vm3 = vcmask 523264   ;;  %s2828_s26 = smov 96   ;;  %s2832_s30 = smov 48   ;;  %s3401_s0 = inlined_call_operand.<no memory space> [shape: s32[1], index: 0, kind: input, shape index: {}]   ;;  %s3402_s5 = inlined_call_operand.vmem [shape: f32[64,32], index: 5, kind: input, shape index: {}]   ;;  %s3403_s1 = inlined_call_operand.<no memory space> [shape: f32[1], index: 1, kind: input, shape index: {}]   ;;  %s3404_s2 = inlined_call_operand.vmem [shape: s32[16,1], index: 2, kind: input, shape index: {}]   ;;  %s3405_s23 = inlined_call_operand.vmem [shape: s32[16,1], index: 23, kind: output, shape index: {1}]   ;;  %s3406_s24 = inlined_call_operand.vmem [shape: s32[16,1], index: 24, kind: output, shape index: {2}]   ;;  %s3407_s3 = inlined_call_operand.vmem [shape: f32[16,32], index: 3, kind: input, shape index: {}]   ;;  %s3408_s8 = inlined_call_operand.vmem [shape: f32[2,32,96], index: 8, kind: input, shape index: {}]   ;;  %s3409_s6 = inlined_call_operand.vmem [shape: f32[2,1,32], index: 6, kind: input, shape index: {}]   ;;  %s3410_s7 = inlined_call_operand.vmem [shape: f32[2,1,32], index: 7, kind: input, shape index: {}]   ;;  %s3411_s9 = inlined_call_operand.vmem [shape: f32[2,1,96], index: 9, kind: input, shape index: {}]   ;;  %s3412_s4 = inlined_call_operand.vmem [shape: f32[16,16], index: 4, kind: input, shape index: {}]   ;;  %s3413_s10 = inlined_call_operand.vmem [shape: f32[2,32,32], index: 10, kind: input, shape index: {}]   ;;  %s3414_s11 = inlined_call_operand.vmem [shape: f32[2,1,32], index: 11, kind: input, shape index: {}]   ;;  %s3415_s14 = inlined_call_operand.vmem [shape: f32[2,32,64], index: 14, kind: input, shape index: {}]   ;;  %s3416_s12 = inlined_call_operand.vmem [shape: f32[2,1,32], index: 12, kind: input, shape index: {}]   ;;  %s3417_s13 = inlined_call_operand.vmem [shape: f32[2,1,32], index: 13, kind: input, shape index: {}]   ;;  %s3418_s16 = inlined_call_operand.vmem [shape: f32[2,64,32], index: 16, kind: input, shape index: {}]   ;;  %s3419_s15 = inlined_call_operand.vmem [shape: f32[2,1,64], index: 15, kind: input, shape index: {}]   ;;  %s3420_s17 = inlined_call_operand.vmem [shape: f32[2,1,32], index: 17, kind: input, shape index: {}]   ;;  %s3421_s20 = inlined_call_operand.vmem [shape: f32[32,128], index: 20, kind: input, shape index: {}]   ;;  %s3422_s18 = inlined_call_operand.vmem [shape: f32[1,32], index: 18, kind: input, shape index: {}]   ;;  %s3423_s19 = inlined_call_operand.vmem [shape: f32[1,32], index: 19, kind: input, shape index: {}]   ;;  %s3424_s21 = inlined_call_operand.vmem [shape: f32[1,128], index: 21, kind: input, shape index: {}]   ;;  %s3425_s22 = inlined_call_operand.vmem [shape: f32[16,128], index: 22, kind: output, shape index: {0}]  }
   0x1   :  { %3436 = sst [smem:[#allocation4_spill]] %s3401_s0  ;;  %2725 = vset.pattern.permute.xlu0 %v2826_v1  ;;  %v2827_v62 = vmov 0.0   ;;  %vm243_vm6 = vcmask 261120   ;;  %vm385_vm7 = vcmask 130048   ;;  %s3433_s0 = smov 16  }
   0x2   :  { %3437 = sst [smem:[#allocation5_spill]] %s3402_s5  ;;  %s3445_s27 = sld [smem:[#allocation4_spill]]  ;;  %v79_v3 = vshrl.u32 %v78_v0, 7  ;;  %v134_v60 = vand.u32 127, %v78_v0  ;;  %vm3066_vm8 = vmpackc.low %vm385_vm7, %vm385_vm7 }
   0x3   :  { %3438 = sst [smem:[#allocation6_spill]] %s3403_s1  ;;  %s3446_s29 = sld [smem:[#allocation5_spill]] }
   0x4   :  { %3439 = sst [smem:[#allocation7_spill]] %s3404_s2  ;;  %v81_v10 = vmul.u32 1000003, %v79_v3  ;;  %v80_v11 = vadd.s32 8, %v79_v3  ;;  %s3457_s5 = smov 16  }
   0x5   :  { %3440 = sst [smem:[#allocation8_spill]] %s3405_s23 }
   0x6   :  { %3441 = sst [smem:[#allocation9_spill]] %s3406_s24  ;;  %v82_v15 = vmul.u32 1000003, %v80_v11  ;;  %s3450_s1 = sld [smem:[#allocation8_spill]] }
   0x7   :  { %3442 = sst [smem:[#allocation10_spill]] %s3407_s3  ;;  %s3447_s3 = sld [smem:[#allocation6_spill]] }
   0x8   :  { %3443 = sst [smem:[#allocation11_spill]] %s3408_s8  ;;  %s83_s28 = smul.u32 374761393, %s3445_s27 }
   0x9   :  { %3444 = sst [smem:[#allocation12_spill]] %s3409_s6  ;;  %v147_v2 = vld [vmem:[%s3446_s29] sm:$0xff]  ;;  %v148_v4 = vld [vmem:[%s3446_s29 + $0x8] sm:$0xff]  ;;  %v149_v5 = vld [vmem:[%s3446_s29 + $0x10] sm:$0xff]  ;;  %s3448_s8 = sld [smem:[#allocation7_spill]] }
   0xa   :  { %v150_v6 = vld [vmem:[%s3446_s29 + $0x18] sm:$0xff]  ;;  %v84_v7 = vstv %s83_s28  ;;  %v2573_v8 = vpack.c.bf16 %v148_v4, %v147_v2  ;;  %v151_v12 = vld [vmem:[%s3446_s29 + $0x20] sm:$0xff]  ;;  %v152_v13 = vld [vmem:[%s3446_s29 + $0x28] sm:$0xff]  ;;  %s3449_s27 = sld [smem:[#allocation9_spill]]  ;;  %s3451_s6 = sld [smem:[#allocation10_spill]] }
   0xb   :  { %v2577_v9 = vpack.c.bf16 %v150_v6, %v149_v5  ;;  %v85_v14 = vadd.s32 %v84_v7, %v81_v10  ;;  %v2581_v16 = vpack.c.bf16 %v152_v13, %v151_v12  ;;  %v86_v18 = vadd.s32 %v84_v7, %v82_v15  ;;  %v153_v55 = vld [vmem:[%s3446_s29 + $0x30] sm:$0xff]  ;;  %v154_v56 = vld [vmem:[%s3446_s29 + $0x38] sm:$0xff]  ;;  %s3453_s25 = sld [smem:[#allocation12_spill]]  ;;  %s3435_s29 = smov 64  }
   0xc   :  { %2574 = vmatprep.subr.bf16.mxu0 %v2573_v8  ;;  %v2585_v57 = vpack.c.bf16 %v154_v56, %v153_v55 }
   0xd   :  { %2576 = vmatpush3.bf16.msra.mxu0 %v2573_v8  ;;  %v87_v17 = vadd.s32 12345, %v85_v14  ;;  %v88_v20 = vadd.s32 12345, %v86_v18  ;;  %v119_v47 = vstv %s3447_s3 }
   0xe   :  { %2578 = vmatprep.subr.bf16.mxu0 %v2577_v9 }
   0xf   :  { %v89_v19 = vand.u32 2147483647, %v87_v17  ;;  %v90_v22 = vand.u32 2147483647, %v88_v20  ;;  %v122_v49 = vld [vmem:[%s3448_s8] sm:$0xff]  ;;  %v123_v52 = vld [vmem:[%s3448_s8 + $0x8] sm:$0xff] }
  0x10   :  { %v155_v3 = vld [vmem:[%s3451_s6] sm:$0xff]  ;;  %v156_v0 = vld [vmem:[%s3451_s6 + $0x8] sm:$0xff]  ;;  %s2829_s8 = smov 80  }
  0x11   :  { %2580 = vmatpush3.bf16.msra.mxu0 %v2577_v9  ;;  %v91_v21 = vshra.s32 %v89_v19, 15  ;;  %v92_v24 = vshra.s32 %v90_v22, 15 }
  0x12   :  { %2582 = vmatprep.subr.bf16.mxu0 %v2581_v16 }
  0x13   :  { %v93_v23 = vxor.u32 %v91_v21, %v89_v19  ;;  %v94_v26 = vxor.u32 %v92_v24, %v90_v22 }
  0x15   :  { %2584 = vmatpush3.bf16.msra.mxu0 %v2581_v16  ;;  %v95_v25 = vmul.u32 668265263, %v93_v23  ;;  %v96_v28 = vmul.u32 668265263, %v94_v26 }
  0x16   :  { %2586 = vmatprep.subr.bf16.mxu0 %v2585_v57 }
  0x17   :  { %v97_v27 = vand.u32 2147483647, %v95_v25  ;;  %v98_v30 = vand.u32 2147483647, %v96_v28 }
  0x19   :  { %v99_v29 = vshra.s32 %v97_v27, 13  ;;  %v100_v32 = vshra.s32 %v98_v30, 13  ;;  %2588 = vmatpush3.bf16.msra.mxu0 %v2585_v57 }
  0x1b   :  { %v101_v31 = vxor.u32 %v99_v29, %v97_v27  ;;  %v102_v34 = vxor.u32 %v100_v32, %v98_v30 }
  0x1d   :  { %v103_v33 = vmul.u32 1274126177, %v101_v31  ;;  %v104_v36 = vmul.u32 1274126177, %v102_v34 }
  0x1f   :  { %v105_v35 = vand.u32 2147483647, %v103_v33  ;;  %v106_v38 = vand.u32 2147483647, %v104_v36  ;;  %v2190_v33 = vld [vmem:[%s3453_s25] ss:$0 sm:$0xff] }
  0x21   :  { %v107_v37 = vshra.s32 %v105_v35, 16  ;;  %v108_v40 = vshra.s32 %v106_v38, 16 }
  0x23   :  { %v109_v39 = vxor.u32 %v107_v37, %v105_v35  ;;  %v110_v42 = vxor.u32 %v108_v40, %v106_v38  ;;  %v2191_v35 = vld [vmem:[%s3410_s7] ss:$0 sm:$0xff] }
  0x25   :  { %v111_v41 = vand.u32 2147483647, %v109_v39  ;;  %v112_v44 = vand.u32 2147483647, %v110_v42  ;;  %v2192_v42 = vld [vmem:[%s3411_s9] ss:$0 sm:$0xff] }
  0x27   :  { %v113_v43 = vshra.s32 %v111_v41, 7  ;;  %v114_v46 = vshra.s32 %v112_v44, 7 }
  0x29   :  { %v115_v45 = vcvt.s32.f32 %v113_v43  ;;  %v116_v50 = vcvt.s32.f32 %v114_v46 }
  0x2b   :  { %v117_v48 = vmul.f32 5.9604645e-08, %v115_v45  ;;  %v118_v51 = vmul.f32 5.9604645e-08, %v116_v50 }
  0x2d   :  { %vm120_vm1 = vcmp.lt.f32.partialorder %v117_v48, %v119_v47  ;;  %vm121_vm2 = vcmp.lt.f32.partialorder %v118_v51, %v119_v47 }
  0x2e   :  { %v124_v53 = vsel %vm120_vm1, 63, %v122_v49  ;;  %v129_v54 = vsel %vm120_vm1, 1, %v2826_v1  ;;  %v125_v58 = vsel %vm121_vm2, 63, %v123_v52  ;;  %v130_v59 = vsel %vm121_vm2, 1, %v2826_v1 }
  0x2f   :  { %131 = vst.msk [vmem:[%s3449_s27] sm:$0xff] %vm126_vm0, %v129_v54  ;;  %136 = vperm.xlu0 %2725, %v124_v53   ;;  %127 = vst.msk [vmem:[%s3450_s1] sm:$0xff] %vm126_vm0, %v124_v53  ;;  %v3078_v53 = vld [vmem:[%s3412_s4 + $0x8] sm:$0xff]  ;;  %v3083_v54 = vld [vmem:[%s3412_s4] sm:$0xff]  ;;  %s2831_s4 = smov 112  }
  0x30   :  { %128 = vst.msk [vmem:[%s3450_s1 + $0x8] sm:$0xff] %vm126_vm0, %v125_v58  ;;  %132 = vst.msk [vmem:[%s3449_s27 + $0x8] sm:$0xff] %vm126_vm0, %v130_v59  ;;  %s3452_s27 = sld [smem:[#allocation11_spill]] }
  0x33   :  { %139 = vperm.xlu0 %2725, %v125_v58  }
  0x36   :  { %v287_v20 = vld [vmem:[%s3452_s27] sm:$0xff]  ;;  %v288_v21 = vld [vmem:[%s3452_s27 + $0x8] sm:$0xff]  ;;  %v289_v22 = vld [vmem:[%s3452_s27 + $0x10] sm:$0xff] }
  0x37   :  { %v2589_v23 = vpack.c.bf16 %v288_v21, %v287_v20  ;;  %v290_v24 = vld [vmem:[%s3452_s27 + $0x18] sm:$0xff] }
  0x38   :  { %v2593_v25 = vpack.c.bf16 %v290_v24, %v289_v22 }
  0x39   :  { %2590 = vmatprep.subr.bf16.mxu1 %v2589_v23 }
  0x3a   :  { %2592 = vmatpush3.bf16.msra.mxu1 %v2589_v23 }
  0x3b   :  { %2594 = vmatprep.subr.bf16.mxu1 %v2593_v25 }
  0x3e   :  { %2596 = vmatpush3.bf16.msra.mxu1 %v2593_v25 }
  0xae   :  { %v137_v61 = vpop.permute.xlu0 %136 }
  0xaf   :  { %vm141_vm4 = vcmp.eq.s32.totalorder %v137_v61, %v134_v60 }
  0xb0   :  { %v2186_v63 = vsel %vm141_vm4, 1.0, %v2827_v62 }
  0xb1   :  { %2399 = vmatprep.mubr.msk.f32.mxu0 %vm157_vm3, %v2186_v63 }
  0xb2   :  { %v140_v1 = vpop.permute.xlu0 %139 }
  0xb3   :  { %vm142_vm5 = vcmp.eq.s32.totalorder %v140_v1, %v134_v60 }
  0xb4   :  { %v2187_v2 = vsel %vm142_vm5, 1.0, %v2827_v62 }
  0xb5   :  { %2400 = vmatmul.mubr.msk.f32.vlgmr.msra.gmra.mrb[0].mxu0 %vm157_vm3, %v2187_v2 }
 0x188   :  { %v2401_v4 = vpop.f32.mrb[0].mxu0 }
 0x189   :  { %v230_v5 = vpop.f32.mrb[1].mxu0  ;;  %v3026_v7 = vadd.f32 %v2401_v4, %v156_v0 }
 0x18a   :  { %v3024_v6 = vadd.f32 %v230_v5, %v155_v3 }
 0x18b   :  { %v247_v9 = vsel %vm243_vm6, %v3026_v7, 0.0 }
 0x18c   :  { %v244_v8 = vsel %vm243_vm6, %v3024_v6, 0.0 }
 0x18d   :  { %245 = vadd.xlane.f32.xlu1 %v244_v8 }
 0x191   :  { %248 = vadd.xlane.f32.xlu1 %v247_v9 }
 0x21a   :  { %v246_v10 = vpop.xlane.xlu1 %245 }
 0x21b   :  { %v251_v11 = vmul.f32 0.03125, %v246_v10 }
 0x21d   :  { %v253_v12 = vsub.f32 %v3024_v6, %v251_v11 }
 0x21e   :  { %v249_v13 = vpop.xlane.xlu1 %248 }
 0x21f   :  { %v252_v14 = vmul.f32 0.03125, %v249_v13  ;;  %v255_v15 = vmul.f32 %v253_v12, %v253_v12 }
 0x221   :  { %v254_v16 = vsub.f32 %v3026_v7, %v252_v14  ;;  %v257_v17 = vsel %vm243_vm6, %v255_v15, 0.0 }
 0x222   :  { %258 = vadd.xlane.f32.xlu0 %v257_v17 }
 0x223   :  { %v256_v18 = vmul.f32 %v254_v16, %v254_v16 }
 0x225   :  { %v260_v19 = vsel %vm243_vm6, %v256_v18, 0.0 }
 0x226   :  { %261 = vadd.xlane.f32.xlu1 %v260_v19 }
 0x2af   :  { %v259_v26 = vpop.xlane.xlu0 %258 }
 0x2b0   :  { %v263_v27 = vmul.f32 0.03125, %v259_v26 }
 0x2b2   :  { %v265_v28 = vadd.f32 1e-05, %v263_v27 }
 0x2b3   :  { %v262_v29 = vpop.xlane.xlu1 %261 }
 0x2b4   :  { %2766 = vrsqrt.f32 %v265_v28  ;;  %v264_v30 = vmul.f32 0.03125, %v262_v29 }
 0x2b6   :  { %v266_v31 = vadd.f32 1e-05, %v264_v30 }
 0x2b8   :  { %2768 = vrsqrt.f32 %v266_v31 }
 0x2be   :  { %v2767_v32 = vpop.eup %2766 }
 0x2bf   :  { %v269_v34 = vmul.f32 %v2767_v32, %v253_v12 }
 0x2c1   :  { %v277_v36 = vmul.f32 %v2190_v33, %v269_v34 }
 0x2c2   :  { %v2769_v37 = vpop.eup %2768 }
 0x2c3   :  { %v270_v38 = vmul.f32 %v2769_v37, %v254_v16  ;;  %v285_v39 = vadd.f32 %v2191_v35, %v277_v36 }
 0x2c5   :  { %v278_v40 = vmul.f32 %v2190_v33, %v270_v38  ;;  %2410 = vmatprep.mubr.msk.f32.mxu1 %vm243_vm6, %v285_v39 }
 0x2c7   :  { %v286_v41 = vadd.f32 %v2191_v35, %v278_v40 }
 0x2c9   :  { %2411 = vmatmul.mubr.msk.f32.vlgmr.msra.gmra.mrb[0].mxu1 %vm243_vm6, %v286_v41 }
 0x39c   :  { %v2412_v43 = vpop.f32.mrb[0].mxu1 }
 0x39d   :  { %v376_v44 = vadd.f32 %v2412_v43, %v2192_v42  ;;  %v370_v45 = vpop.f32.mrb[1].mxu1 }
 0x39e   :  { %v371_v46 = vadd.f32 %v2192_v42, %v370_v45 }
 0x3a0   :  { %2417 = vmatprep.mubr.msk.f32.mxu1 %vm385_vm7, %v371_v46  ;;  %v3060_v47 = vpack.i.bf16 %v376_v44, %v371_v46 }
 0x3a2   :  { %2727 = vrot.lane.b32.xlu1 %v3060_v47, %s2828_s26 }
 0x414   :  { %v2728_v48 = vpop.permute.xlu1 %2727 }
 0x415   :  { %v2730_v49 = vunpack.i.h.bf16 %v2728_v48  ;;  %v2729_v50 = vunpack.i.l.bf16 %v2728_v48 }
 0x417   :  { %v2597_v52 = vpack.c.bf16 %v2730_v49, %v2729_v50 }
 0x419   :  { %2599 = vmatprep.subr.msk.bf16.mxu1 %vm3066_vm8, %v2597_v52 }
 0x41a   :  { %2602 = vmatpush3.bf16.xpose.msk.msra.mxu1 %vm3066_vm8, %v2597_v52 }
 0x421   :  { %2418 = vmatmul.mubr.msk.f32.vlgmr.msra.gmra.mrb[2].mxu1 %vm385_vm7, %v376_v44 }
 0x4f4   :  { %v2419_v55 = vpop.f32.mrb[2].mxu1 }
 0x4f5   :  { %v466_v56 = vadd.f32 %v2419_v55, %v3078_v53  ;;  %v460_v57 = vpop.f32.mrb[3].mxu1 }
 0x4f6   :  { %v461_v58 = vadd.f32 %v460_v57, %v3083_v54  ;;  %v789_v57 = vld [vmem:[%s3413_s10 + $0x8] sm:$0xff] }
 0x4f7   :  { %v472_v59 = vsel %vm385_vm7, %v466_v56, -inf }
 0x4f8   :  { %473 = vmax.xlane.f32.xlu0 %v472_v59  ;;  %v469_v60 = vsel %vm385_vm7, %v461_v58, -inf }
 0x4f9   :  { %470 = vmax.xlane.f32.xlu1 %v469_v60  ;;  %v791_v60 = vld [vmem:[%s3413_s10 + $0x18] sm:$0xff] }
 0x50a   :  { %2737 = vrot.lane.b32.xlu1 %v3060_v47, %s2829_s8 }
 0x50e   :  { %2732 = vrot.lane.b32.xlu0 %v3060_v47, %s3435_s29 }
 0x585   :  { %v474_v61 = vpop.xlane.xlu0 %473 }
 0x586   :  { %v476_v62 = vsub.f32 %v466_v56, %v474_v61  ;;  %v471_v63 = vpop.xlane.xlu1 %470  ;;  %v788_v56 = vld [vmem:[%s3413_s10] sm:$0xff] }
 0x587   :  { %v475_v1 = vsub.f32 %v461_v58, %v471_v63  ;;  %v790_v58 = vld [vmem:[%s3413_s10 + $0x10] sm:$0xff]  ;;  %v2617_v59 = vpack.c.bf16 %v789_v57, %v788_v56 }
 0x588   :  { %v479_v2 = vmul.f32 1.442695, %v476_v62  ;;  %v2621_v61 = vpack.c.bf16 %v791_v60, %v790_v58  ;;  %v1042_v57 = vld [vmem:[%s3418_s16 + $0x30] sm:$0xff]  ;;  %v1043_v58 = vld [vmem:[%s3418_s16 + $0x38] sm:$0xff]  ;;  %v2212_v60 = vld [vmem:[%s3419_s15] ss:$0 sm:$0xff] }
 0x589   :  { %v477_v3 = vmul.f32 1.442695, %v475_v1  ;;  %v2733_v4 = vpop.permute.xlu0 %2732 }
 0x58a   :  { %2770 = vpow2.f32 %v479_v2  ;;  %v2735_v0 = vunpack.i.h.bf16 %v2733_v4  ;;  %v2734_v5 = vunpack.i.l.bf16 %v2733_v4  ;;  %v2738_v8 = vpop.permute.xlu1 %2737 }
 0x58b   :  { %v2740_v9 = vunpack.i.h.bf16 %v2738_v8  ;;  %v2739_v10 = vunpack.i.l.bf16 %v2738_v8  ;;  %2772 = vpow2.f32 %v477_v3 }
 0x58c   :  { %v2603_v11 = vpack.c.bf16 %v2735_v0, %v2734_v5  ;;  %v2207_v0 = vld [vmem:[%s3414_s11] ss:$0 sm:$0xff] }
 0x58d   :  { %v2607_v12 = vpack.c.bf16 %v2740_v9, %v2739_v10 }
 0x58e   :  { %2604 = vmatprep.subr.bf16.mxu1 %v2603_v11 }
 0x58f   :  { %2606 = vmatpush3.bf16.msra.mxu1 %v2603_v11 }
 0x590   :  { %2609 = vmatprep.subr.msk.bf16.mxu1 %vm3066_vm8, %v2607_v12 }
 0x594   :  { %v2771_v13 = vpop.eup %2770 }
 0x595   :  { %v484_v14 = vsel %vm385_vm7, %v2771_v13, 0.0  ;;  %v2773_v15 = vpop.eup %2772 }
 0x596   :  { %485 = vadd.xlane.f32.xlu0 %v484_v14  ;;  %v481_v16 = vsel %vm385_vm7, %v2773_v15, 0.0 }
 0x59a   :  { %482 = vadd.xlane.f32.xlu0 %v481_v16 }
 0x5b0   :  { %578 = vrot.lane.b32.xlu0 %v371_v46, %s2831_s4 }
 0x5b4   :  { %580 = vrot.lane.b32.xlu0 %v376_v44, %s2831_s4 }
 0x623   :  { %v486_v17 = vpop.xlane.xlu0 %485 }
 0x624   :  { %2774 = vrcp.f32 %v486_v17 }
 0x627   :  { %v483_v18 = vpop.xlane.xlu0 %482 }
 0x628   :  { %2776 = vrcp.f32 %v483_v18 }
 0x62b   :  { %v579_v23 = vpop.permute.xlu0 %578 }
 0x62e   :  { %v2775_v19 = vpop.eup %2774 }
 0x62f   :  { %v490_v22 = vmul.f32 %v2775_v19, %v2771_v13  ;;  %v581_v24 = vpop.permute.xlu0 %580 }
 0x632   :  { %v2777_v20 = vpop.eup %2776 }
 0x633   :  { %v488_v21 = vmul.f32 %v2777_v20, %v2773_v15 }
 0x635   :  { %2424 = vmatprep.mubr.msk.f32.mxu1 %vm385_vm7, %v488_v21 }
 0x636   :  { %2425 = vmatmul.mubr.msk.f32.vlgmr.msra.gmra.mrb[4].mxu1 %vm385_vm7, %v490_v22 }
 0x637   :  { %2612 = vmatpush3.bf16.xpose.msk.msra.mxu1 %vm3066_vm8, %v2607_v12  ;;  %2431 = vmatprep.mubr.msk.f32.mxu1 %vm385_vm7, %v579_v23  ;;  %v926_v23 = vld [vmem:[%s3415_s14] sm:$0xff] }
 0x63e   :  { %2432 = vmatmul.mubr.msk.f32.vlgmr.msra.gmra.mrb[6].mxu1 %vm385_vm7, %v581_v24  ;;  %v927_v24 = vld [vmem:[%s3415_s14 + $0x8] sm:$0xff] }
 0x709   :  { %v2426_v25 = vpop.f32.mrb[4].mxu1 }
 0x70a   :  { %v569_v26 = vpop.f32.mrb[5].mxu1 }
 0x711   :  { %v2433_v27 = vpop.f32.mrb[6].mxu1 }
 0x712   :  { %v666_v28 = vadd.f32 %v2433_v27, %v3078_v53  ;;  %v660_v29 = vpop.f32.mrb[7].mxu1  ;;  %v929_v27 = vld [vmem:[%s3415_s14 + $0x18] sm:$0xff] }
 0x713   :  { %v661_v30 = vadd.f32 %v660_v29, %v3083_v54 }
 0x714   :  { %v672_v31 = vsel %vm385_vm7, %v666_v28, -inf }
 0x715   :  { %673 = vmax.xlane.f32.xlu1 %v672_v31  ;;  %v669_v32 = vsel %vm385_vm7, %v661_v30, -inf }
 0x716   :  { %670 = vmax.xlane.f32.xlu0 %v669_v32 }
 0x726   :  { %2742 = vrot.lane.b32.xlu1 %v3060_v47, %s2832_s30 }
 0x7a2   :  { %v674_v33 = vpop.xlane.xlu1 %673 }
 0x7a3   :  { %v676_v34 = vsub.f32 %v666_v28, %v674_v33  ;;  %v671_v35 = vpop.xlane.xlu0 %670 }
 0x7a4   :  { %v675_v36 = vsub.f32 %v661_v30, %v671_v35 }
 0x7a5   :  { %v679_v37 = vmul.f32 1.442695, %v676_v34 }
 0x7a6   :  { %v677_v38 = vmul.f32 1.442695, %v675_v36  ;;  %v2743_v39 = vpop.permute.xlu1 %2742  ;;  %v2210_v36 = vld [vmem:[%s3416_s12] ss:$0 sm:$0xff] }
 0x7a7   :  { %v2745_v40 = vunpack.i.h.bf16 %v2743_v39  ;;  %v2744_v41 = vunpack.i.l.bf16 %v2743_v39 }
 0x7a8   :  { %2778 = vpow2.f32 %v677_v38 }
 0x7a9   :  { %v2613_v42 = vpack.c.bf16 %v2745_v40, %v2744_v41  ;;  %2780 = vpow2.f32 %v679_v37  ;;  %v2211_v40 = vld [vmem:[%s3417_s13] ss:$0 sm:$0xff] }
 0x7ab   :  { %2614 = vmatprep.subr.bf16.mxu0 %v2613_v42 }
 0x7ac   :  { %2616 = vmatpush3.bf16.msra.mxu0 %v2613_v42 }
 0x7ad   :  { %2618 = vmatprep.subr.bf16.mxu0 %v2617_v59 }
 0x7b2   :  { %v2779_v43 = vpop.eup %2778 }
 0x7b3   :  { %v681_v44 = vsel %vm385_vm7, %v2779_v43, 0.0  ;;  %v2781_v45 = vpop.eup %2780 }
 0x7b4   :  { %682 = vadd.xlane.f32.xlu0 %v681_v44  ;;  %v684_v46 = vsel %vm385_vm7, %v2781_v45, 0.0 }
 0x7b8   :  { %685 = vadd.xlane.f32.xlu0 %v684_v46  ;;  %v1037_v46 = vld [vmem:[%s3418_s16 + $0x8] sm:$0xff] }
 0x841   :  { %v683_v47 = vpop.xlane.xlu0 %682 }
 0x842   :  { %2782 = vrcp.f32 %v683_v47 }
 0x845   :  { %v686_v48 = vpop.xlane.xlu0 %685 }
 0x846   :  { %2784 = vrcp.f32 %v686_v48  ;;  %v1038_v48 = vld [vmem:[%s3418_s16 + $0x10] sm:$0xff] }
 0x84c   :  { %v2783_v49 = vpop.eup %2782 }
 0x84d   :  { %v688_v50 = vmul.f32 %v2783_v49, %v2779_v43  ;;  %v1039_v49 = vld [vmem:[%s3418_s16 + $0x18] sm:$0xff] }
 0x84f   :  { %2438 = vmatprep.mubr.msk.f32.mxu0 %vm385_vm7, %v688_v50  ;;  %v1040_v50 = vld [vmem:[%s3418_s16 + $0x20] sm:$0xff] }
 0x850   :  { %v2785_v52 = vpop.eup %2784 }
 0x851   :  { %v690_v55 = vmul.f32 %v2785_v52, %v2781_v45  ;;  %v1036_v45 = vld [vmem:[%s3418_s16] sm:$0xff]  ;;  %v2637_v52 = vpack.c.bf16 %v1039_v49, %v1038_v48 }
 0x852   :  { %v2633_v47 = vpack.c.bf16 %v1037_v46, %v1036_v45 }
 0x853   :  { %2439 = vmatmul.mubr.msk.f32.vlgmr.msra.gmra.mrb[2].mxu0 %vm385_vm7, %v690_v55  ;;  %v1041_v55 = vld [vmem:[%s3418_s16 + $0x28] sm:$0xff] }
 0x854   :  { %2620 = vmatpush3.bf16.msra.mxu0 %v2617_v59  ;;  %v2641_v56 = vpack.c.bf16 %v1041_v55, %v1040_v50  ;;  %v2645_v59 = vpack.c.bf16 %v1043_v58, %v1042_v57  ;;  %v2221_v57 = vld [vmem:[%s3410_s7 + $0x1] ss:$0 sm:$0xff]  ;;  %s3456_s7 = smov 64  }
 0x855   :  { %2622 = vmatprep.subr.bf16.mxu0 %v2621_v61 }
 0x858   :  { %2624 = vmatpush3.bf16.msra.mxu0 %v2621_v61 }
 0x859   :  { %2634 = vmatprep.subr.bf16.mxu0 %v2633_v47 }
 0x926   :  { %v2440_v62 = vpop.f32.mrb[2].mxu0 }
 0x927   :  { %782 = vrot.lane.b32.xlu1 %v2440_v62, %s3433_s0  ;;  %v769_v63 = vpop.f32.mrb[3].mxu0 }
 0x928   :  { %780 = vrot.lane.b32.xlu0 %v769_v63, %s3433_s0 }
 0x999   :  { %v783_v1 = vpop.permute.xlu1 %782 }
 0x99a   :  { %v781_v2 = vpop.permute.xlu0 %780  ;;  %v787_v4 = vsel %vm385_vm7, %v2426_v25, %v783_v1  ;;  %v2625_v25 = vpack.c.bf16 %v927_v24, %v926_v23 }
 0x99b   :  { %v786_v3 = vsel %vm385_vm7, %v569_v26, %v781_v2  ;;  %v928_v26 = vld [vmem:[%s3415_s14 + $0x10] sm:$0xff] }
 0x99c   :  { %2449 = vmatprep.mubr.msk.f32.mxu0 %vm243_vm6, %v786_v3  ;;  %2626 = vmatprep.subr.bf16.mxu1 %v2625_v25  ;;  %v2629_v28 = vpack.c.bf16 %v929_v27, %v928_v26 }
 0x99d   :  { %2450 = vmatmul.mubr.msk.f32.vlgmr.msra.gmra.mrb[4].mxu0 %vm243_vm6, %v787_v4  ;;  %2628 = vmatpush3.bf16.msra.mxu1 %v2625_v25 }
 0x99e   :  { %2630 = vmatprep.subr.bf16.mxu1 %v2629_v28  ;;  %2636 = vmatpush3.bf16.msra.mxu0 %v2633_v47 }
 0x99f   :  { %2638 = vmatprep.subr.bf16.mxu0 %v2637_v52 }
 0x9a1   :  { %2632 = vmatpush3.bf16.msra.mxu1 %v2629_v28 }
 0x9a2   :  { %2640 = vmatpush3.bf16.msra.mxu0 %v2637_v52  ;;  %v2220_v52 = vld [vmem:[%s3453_s25 + $0x1] ss:$0 sm:$0xff] }
 0x9a3   :  { %2642 = vmatprep.subr.bf16.mxu0 %v2641_v56 }
 0x9a6   :  { %2644 = vmatpush3.bf16.msra.mxu0 %v2641_v56 }
 0x9a7   :  { %2646 = vmatprep.subr.bf16.mxu0 %v2645_v59 }
 0x9aa   :  { %2648 = vmatpush3.bf16.msra.mxu0 %v2645_v59 }
 0xa70   :  { %v2451_v5 = vpop.f32.mrb[4].mxu0 }
 0xa71   :  { %v877_v8 = vadd.f32 %v2451_v5, %v2207_v0  ;;  %v871_v9 = vpop.f32.mrb[5].mxu0 }
 0xa72   :  { %v872_v10 = vadd.f32 %v2207_v0, %v871_v9 }
 0xa73   :  { %v3137_v11 = vadd.f32 %v877_v8, %v3026_v7 }
 0xa74   :  { %v3140_v12 = vadd.f32 %v872_v10, %v3024_v6 }
 0xa75   :  { %v887_v13 = vsel %vm243_vm6, %v3137_v11, 0.0 }
 0xa76   :  { %888 = vadd.xlane.f32.xlu0 %v887_v13  ;;  %v884_v14 = vsel %vm243_vm6, %v3140_v12, 0.0 }
 0xa77   :  { %885 = vadd.xlane.f32.xlu1 %v884_v14 }
 0xb03   :  { %v889_v15 = vpop.xlane.xlu0 %888 }
 0xb04   :  { %v891_v16 = vmul.f32 0.03125, %v889_v15  ;;  %v886_v17 = vpop.xlane.xlu1 %885 }
 0xb05   :  { %v890_v18 = vmul.f32 0.03125, %v886_v17 }
 0xb06   :  { %v893_v19 = vsub.f32 %v3137_v11, %v891_v16 }
 0xb07   :  { %v892_v7 = vsub.f32 %v3140_v12, %v890_v18 }
 0xb08   :  { %v895_v20 = vmul.f32 %v893_v19, %v893_v19 }
 0xb09   :  { %v894_v21 = vmul.f32 %v892_v7, %v892_v7 }
 0xb0a   :  { %v899_v6 = vsel %vm243_vm6, %v895_v20, 0.0 }
 0xb0b   :  { %900 = vadd.xlane.f32.xlu1 %v899_v6  ;;  %v896_v22 = vsel %vm243_vm6, %v894_v21, 0.0  ;;  %v2215_v6 = vld [vmem:[%s3420_s17] ss:$0 sm:$0xff] }
 0xb0c   :  { %897 = vadd.xlane.f32.xlu0 %v896_v22 }
 0xb98   :  { %v901_v29 = vpop.xlane.xlu1 %900 }
 0xb99   :  { %v903_v30 = vmul.f32 0.03125, %v901_v29  ;;  %v898_v31 = vpop.xlane.xlu0 %897 }
 0xb9a   :  { %v902_v32 = vmul.f32 0.03125, %v898_v31 }
 0xb9b   :  { %v905_v33 = vadd.f32 1e-05, %v903_v30 }
 0xb9c   :  { %v904_v34 = vadd.f32 1e-05, %v902_v32 }
 0xb9d   :  { %2786 = vrsqrt.f32 %v905_v33 }
 0xb9e   :  { %2788 = vrsqrt.f32 %v904_v34 }
 0xba7   :  { %v2787_v35 = vpop.eup %2786 }
 0xba8   :  { %v2789_v37 = vpop.eup %2788  ;;  %v909_v38 = vmul.f32 %v2787_v35, %v893_v19 }
 0xba9   :  { %v908_v39 = vmul.f32 %v2789_v37, %v892_v7 }
 0xbaa   :  { %v917_v41 = vmul.f32 %v2210_v36, %v909_v38  ;;  %v2222_v38 = vld [vmem:[%s3452_s27 + $0x20] sm:$0xff] }
 0xbab   :  { %v916_v42 = vmul.f32 %v2210_v36, %v908_v39  ;;  %v2223_v39 = vld [vmem:[%s3452_s27 + $0x28] sm:$0xff] }
 0xbac   :  { %v925_v44 = vadd.f32 %v2211_v40, %v917_v41  ;;  %v2224_v41 = vld [vmem:[%s3452_s27 + $0x30] sm:$0xff] }
 0xbad   :  { %v924_v43 = vadd.f32 %v2211_v40, %v916_v42  ;;  %v2649_v40 = vpack.c.bf16 %v2223_v39, %v2222_v38  ;;  %v2225_v42 = vld [vmem:[%s3452_s27 + $0x38] sm:$0xff] }
 0xbaf   :  { %2460 = vmatprep.mubr.msk.f32.mxu1 %vm243_vm6, %v924_v43  ;;  %2650 = vmatprep.subr.bf16.mxu1 %v2649_v40  ;;  %v2653_v43 = vpack.c.bf16 %v2225_v42, %v2224_v41 }
 0xbb0   :  { %2461 = vmatmul.mubr.msk.f32.vlgmr.msra.gmra.mrb[8].mxu1 %vm243_vm6, %v925_v44 }
 0xbb1   :  { %2652 = vmatpush3.bf16.msra.mxu1 %v2649_v40 }
 0xbb2   :  { %2654 = vmatprep.subr.bf16.mxu1 %v2653_v43 }
 0xbb5   :  { %2656 = vmatpush3.bf16.msra.mxu1 %v2653_v43 }
 0xc83   :  { %v2462_v61 = vpop.f32.mrb[8].mxu1 }
 0xc84   :  { %v1015_v62 = vadd.f32 %v2462_v61, %v2212_v60  ;;  %v1009_v63 = vpop.f32.mrb[9].mxu1 }
 0xc85   :  { %v1010_v1 = vadd.f32 %v2212_v60, %v1009_v63  ;;  %v2227_v63 = vld [vmem:[%s3411_s9 + $0x1] ss:$0 sm:$0xff] }
 0xc86   :  { %v1021_v2 = vmul.f32 0.044715, %v1015_v62  ;;  %v1019_v7 = vmul.f32 0.5, %v1015_v62 }
 0xc87   :  { %v1020_v3 = vmul.f32 0.044715, %v1010_v1  ;;  %v1018_v18 = vmul.f32 0.5, %v1010_v1 }
 0xc88   :  { %v1023_v4 = vmul.f32 %v1021_v2, %v1015_v62 }
 0xc89   :  { %v1022_v0 = vmul.f32 %v1020_v3, %v1010_v1 }
 0xc8a   :  { %v1025_v5 = vmul.f32 %v1023_v4, %v1015_v62 }
 0xc8b   :  { %v1024_v8 = vmul.f32 %v1022_v0, %v1010_v1 }
 0xc8c   :  { %v1027_v9 = vadd.f32 %v1025_v5, %v1015_v62 }
 0xc8d   :  { %v1026_v10 = vadd.f32 %v1024_v8, %v1010_v1 }
 0xc8e   :  { %v1029_v13 = vmul.f32 0.7978846, %v1027_v9 }
 0xc8f   :  { %v1028_v14 = vmul.f32 0.7978846, %v1026_v10 }
 0xc90   :  { %2790 = vtanh.f32 %v1029_v13 }
 0xc91   :  { %2792 = vtanh.f32 %v1028_v14 }
 0xc9a   :  { %v2791_v15 = vpop.eup %2790 }
 0xc9b   :  { %v2793_v16 = vpop.eup %2792  ;;  %v1033_v17 = vadd.f32 1.0, %v2791_v15 }
 0xc9c   :  { %v1032_v19 = vadd.f32 1.0, %v2793_v16 }
 0xc9d   :  { %v1035_v21 = vmul.f32 %v1033_v17, %v1019_v7 }
 0xc9e   :  { %v1034_v20 = vmul.f32 %v1032_v19, %v1018_v18 }
 0xca0   :  { %2479 = vmatprep.mubr.msk.f32.mxu0 %vm157_vm3, %v1034_v20 }
 0xca1   :  { %2480 = vmatmul.mubr.msk.f32.vlgmr.msra.gmra.mrb[6].mxu0 %vm157_vm3, %v1035_v21 }
 0xd74   :  { %v2481_v22 = vpop.f32.mrb[6].mxu0 }
 0xd75   :  { %v1129_v23 = vadd.f32 %v2481_v22, %v2215_v6  ;;  %v1123_v24 = vpop.f32.mrb[7].mxu0 }
 0xd76   :  { %v1124_v25 = vadd.f32 %v2215_v6, %v1123_v24 }
 0xd77   :  { %v3203_v26 = vadd.f32 %v1129_v23, %v3137_v11 }
 0xd78   :  { %v3206_v27 = vadd.f32 %v1124_v25, %v3140_v12 }
 0xd79   :  { %v1141_v28 = vsel %vm243_vm6, %v3203_v26, 0.0 }
 0xd7a   :  { %1142 = vadd.xlane.f32.xlu1 %v1141_v28  ;;  %v1138_v29 = vsel %vm243_vm6, %v3206_v27, 0.0 }
 0xd7b   :  { %1139 = vadd.xlane.f32.xlu0 %v1138_v29 }
 0xe07   :  { %v1143_v30 = vpop.xlane.xlu1 %1142 }
 0xe08   :  { %v1145_v31 = vmul.f32 0.03125, %v1143_v30  ;;  %v1140_v32 = vpop.xlane.xlu0 %1139 }
 0xe09   :  { %v1144_v33 = vmul.f32 0.03125, %v1140_v32 }
 0xe0a   :  { %v1147_v34 = vsub.f32 %v3203_v26, %v1145_v31 }
 0xe0b   :  { %v1146_v11 = vsub.f32 %v3206_v27, %v1144_v33 }
 0xe0c   :  { %v1149_v35 = vmul.f32 %v1147_v34, %v1147_v34 }
 0xe0d   :  { %v1148_v36 = vmul.f32 %v1146_v11, %v1146_v11 }
 0xe0e   :  { %v1153_v12 = vsel %vm243_vm6, %v1149_v35, 0.0 }
 0xe0f   :  { %1154 = vadd.xlane.f32.xlu1 %v1153_v12  ;;  %v1150_v37 = vsel %vm243_vm6, %v1148_v36, 0.0 }
 0xe10   :  { %1151 = vadd.xlane.f32.xlu0 %v1150_v37 }
 0xe9c   :  { %v1155_v44 = vpop.xlane.xlu1 %1154 }
 0xe9d   :  { %v1157_v45 = vmul.f32 0.03125, %v1155_v44  ;;  %v1152_v46 = vpop.xlane.xlu0 %1151 }
 0xe9e   :  { %v1156_v47 = vmul.f32 0.03125, %v1152_v46 }
 0xe9f   :  { %v1159_v48 = vadd.f32 1e-05, %v1157_v45 }
 0xea0   :  { %v1158_v49 = vadd.f32 1e-05, %v1156_v47 }
 0xea1   :  { %2794 = vrsqrt.f32 %v1159_v48 }
 0xea2   :  { %2796 = vrsqrt.f32 %v1158_v49 }
 0xeab   :  { %v2795_v50 = vpop.eup %2794 }
 0xeac   :  { %v2797_v55 = vpop.eup %2796  ;;  %v1163_v56 = vmul.f32 %v2795_v50, %v1147_v34 }
 0xead   :  { %v1162_v58 = vmul.f32 %v2797_v55, %v1146_v11 }
 0xeae   :  { %v1171_v59 = vmul.f32 %v2220_v52, %v1163_v56 }
 0xeaf   :  { %v1170_v60 = vmul.f32 %v2220_v52, %v1162_v58 }
 0xeb0   :  { %v1179_v61 = vadd.f32 %v2221_v57, %v1171_v59 }
 0xeb1   :  { %v1178_v62 = vadd.f32 %v2221_v57, %v1170_v60 }
 0xeb3   :  { %2490 = vmatprep.mubr.msk.f32.mxu1 %vm243_vm6, %v1178_v62 }
 0xeb4   :  { %2491 = vmatmul.mubr.msk.f32.vlgmr.msra.gmra.mrb[10].mxu1 %vm243_vm6, %v1179_v61 }
 0xf87   :  { %v2492_v1 = vpop.f32.mrb[10].mxu1 }
 0xf88   :  { %v1271_v2 = vadd.f32 %v2492_v1, %v2227_v63  ;;  %v1265_v3 = vpop.f32.mrb[11].mxu1 }
 0xf89   :  { %v1266_v4 = vadd.f32 %v2227_v63, %v1265_v3 }
 0xf8b   :  { %2497 = vmatprep.mubr.msk.f32.mxu1 %vm385_vm7, %v1266_v4  ;;  %v3240_v0 = vpack.i.bf16 %v1271_v2, %v1266_v4 }
 0xf8d   :  { %2752 = vrot.lane.b32.xlu1 %v3240_v0, %s2829_s8  ;;  %2747 = vrot.lane.b32.xlu0 %v3240_v0, %s2828_s26 }
 0xf91   :  { %1472 = vrot.lane.b32.xlu1 %v1266_v4, %s2831_s4  ;;  %1474 = vrot.lane.b32.xlu0 %v1271_v2, %s2831_s4 }
 0xfff   :  { %v2753_v5 = vpop.permute.xlu1 %2752  ;;  %v2748_v8 = vpop.permute.xlu0 %2747 }
0x1000   :  { %v2755_v9 = vunpack.i.h.bf16 %v2753_v5  ;;  %v2754_v10 = vunpack.i.l.bf16 %v2753_v5  ;;  %v2750_v13 = vunpack.i.h.bf16 %v2748_v8  ;;  %v2749_v14 = vunpack.i.l.bf16 %v2748_v8  ;;  %v2242_v5 = vld [vmem:[%s3413_s10 + $0x20] sm:$0xff]  ;;  %v2243_v8 = vld [vmem:[%s3413_s10 + $0x28] sm:$0xff] }
0x1002   :  { %v2657_v15 = vpack.c.bf16 %v2750_v13, %v2749_v14  ;;  %v2667_v16 = vpack.c.bf16 %v2755_v9, %v2754_v10  ;;  %v2244_v9 = vld [vmem:[%s3413_s10 + $0x30] sm:$0xff]  ;;  %v2677_v10 = vpack.c.bf16 %v2243_v8, %v2242_v5  ;;  %v2245_v13 = vld [vmem:[%s3413_s10 + $0x38] sm:$0xff] }
0x1003   :  { %v1473_v17 = vpop.permute.xlu1 %1472  ;;  %v1475_v18 = vpop.permute.xlu0 %1474  ;;  %v2681_v14 = vpack.c.bf16 %v2245_v13, %v2244_v9  ;;  %v2268_v5 = vld [vmem:[%s3418_s16 + $0x70] sm:$0xff]  ;;  %v2269_v8 = vld [vmem:[%s3418_s16 + $0x78] sm:$0xff] }
0x1004   :  { %2659 = vmatprep.subr.msk.bf16.mxu1 %vm3066_vm8, %v2657_v15  ;;  %v2705_v9 = vpack.c.bf16 %v2269_v8, %v2268_v5 }
0x1005   :  { %2662 = vmatpush3.bf16.xpose.msk.msra.mxu1 %vm3066_vm8, %v2657_v15 }
0x1006   :  { %2669 = vmatprep.subr.msk.bf16.mxu1 %vm3066_vm8, %v2667_v16 }
0x100c   :  { %2498 = vmatmul.mubr.msk.f32.vlgmr.msra.gmra.mrb[12].mxu1 %vm385_vm7, %v1271_v2 }
0x100d   :  { %2672 = vmatpush3.bf16.xpose.msk.msra.mxu1 %vm3066_vm8, %v2667_v16  ;;  %2511 = vmatprep.mubr.msk.f32.mxu1 %vm385_vm7, %v1473_v17 }
0x1014   :  { %2512 = vmatmul.mubr.msk.f32.vlgmr.msra.gmra.mrb[14].mxu1 %vm385_vm7, %v1475_v18 }
0x10df   :  { %v2499_v19 = vpop.f32.mrb[12].mxu1 }
0x10e0   :  { %v1360_v7 = vadd.f32 %v2499_v19, %v3078_v53  ;;  %v1354_v20 = vpop.f32.mrb[13].mxu1 }
0x10e1   :  { %v1355_v21 = vadd.f32 %v1354_v20, %v3083_v54 }
0x10e2   :  { %v1366_v6 = vsel %vm385_vm7, %v1360_v7, -inf }
0x10e3   :  { %1367 = vmax.xlane.f32.xlu0 %v1366_v6  ;;  %v1363_v22 = vsel %vm385_vm7, %v1355_v21, -inf  ;;  %v2247_v6 = vld [vmem:[%s3414_s11 + $0x1] ss:$0 sm:$0xff] }
0x10e4   :  { %1364 = vmax.xlane.f32.xlu1 %v1363_v22 }
0x10e7   :  { %v2513_v23 = vpop.f32.mrb[14].mxu1 }
0x10e8   :  { %v1560_v51 = vadd.f32 %v2513_v23, %v3078_v53  ;;  %v1554_v24 = vpop.f32.mrb[15].mxu1 }
0x10e9   :  { %v1555_v25 = vadd.f32 %v1554_v24, %v3083_v54 }
0x10ea   :  { %v1566_v28 = vsel %vm385_vm7, %v1560_v51, -inf }
0x10eb   :  { %1567 = vmax.xlane.f32.xlu1 %v1566_v28  ;;  %v1563_v29 = vsel %vm385_vm7, %v1555_v25, -inf }
0x10ec   :  { %1564 = vmax.xlane.f32.xlu0 %v1563_v29 }
0x1170   :  { %v1368_v30 = vpop.xlane.xlu0 %1367 }
0x1171   :  { %v1370_v31 = vsub.f32 %v1360_v7, %v1368_v30  ;;  %v1365_v32 = vpop.xlane.xlu1 %1364 }
0x1172   :  { %v1369_v33 = vsub.f32 %v1355_v21, %v1365_v32 }
0x1173   :  { %v1373_v34 = vmul.f32 1.442695, %v1370_v31 }
0x1174   :  { %v1371_v11 = vmul.f32 1.442695, %v1369_v33 }
0x1175   :  { %2798 = vpow2.f32 %v1373_v34 }
0x1176   :  { %2800 = vpow2.f32 %v1371_v11 }
0x1178   :  { %v1568_v35 = vpop.xlane.xlu1 %1567 }
0x1179   :  { %v1570_v36 = vsub.f32 %v1560_v51, %v1568_v35  ;;  %v1565_v53 = vpop.xlane.xlu0 %1564 }
0x117a   :  { %v1569_v12 = vsub.f32 %v1555_v25, %v1565_v53 }
0x117b   :  { %v1573_v37 = vmul.f32 1.442695, %v1570_v36 }
0x117c   :  { %v1571_v54 = vmul.f32 1.442695, %v1569_v12  ;;  %v2254_v12 = vld [vmem:[%s3415_s14 + $0x20] sm:$0xff] }
0x117d   :  { %2802 = vpow2.f32 %v1573_v37  ;;  %v2255_v37 = vld [vmem:[%s3415_s14 + $0x28] sm:$0xff] }
0x117e   :  { %2804 = vpow2.f32 %v1571_v54  ;;  %v2685_v54 = vpack.c.bf16 %v2255_v37, %v2254_v12 }
0x117f   :  { %v2799_v38 = vpop.eup %2798 }
0x1180   :  { %v2801_v39 = vpop.eup %2800  ;;  %v1378_v40 = vsel %vm385_vm7, %v2799_v38, 0.0  ;;  %2686 = vmatprep.subr.bf16.mxu1 %v2685_v54 }
0x1181   :  { %1379 = vadd.xlane.f32.xlu1 %v1378_v40  ;;  %v1375_v41 = vsel %vm385_vm7, %v2801_v39, 0.0  ;;  %2688 = vmatpush3.bf16.msra.mxu1 %v2685_v54 }
0x1182   :  { %1376 = vadd.xlane.f32.xlu0 %v1375_v41 }
0x1187   :  { %v2803_v42 = vpop.eup %2802 }
0x1188   :  { %v2805_v43 = vpop.eup %2804  ;;  %v1578_v44 = vsel %vm385_vm7, %v2803_v42, 0.0 }
0x1189   :  { %1579 = vadd.xlane.f32.xlu1 %v1578_v44  ;;  %v1575_v45 = vsel %vm385_vm7, %v2805_v43, 0.0 }
0x118a   :  { %1576 = vadd.xlane.f32.xlu0 %v1575_v45 }
0x119a   :  { %2762 = vrot.lane.b32.xlu1 %v3240_v0, %s2832_s30 }
0x11a0   :  { %2757 = vrot.lane.b32.xlu0 %v3240_v0, %s3456_s7 }
0x120e   :  { %v1380_v47 = vpop.xlane.xlu1 %1379 }
0x120f   :  { %v1377_v46 = vpop.xlane.xlu0 %1376 }
0x1210   :  { %2806 = vrcp.f32 %v1377_v46 }
0x1211   :  { %2808 = vrcp.f32 %v1380_v47 }
0x1216   :  { %v1580_v48 = vpop.xlane.xlu1 %1579 }
0x1217   :  { %v1577_v49 = vpop.xlane.xlu0 %1576 }
0x1218   :  { %2810 = vrcp.f32 %v1577_v49 }
0x1219   :  { %2812 = vrcp.f32 %v1580_v48  ;;  %v2252_v48 = vld [vmem:[%s3416_s12 + $0x1] ss:$0 sm:$0xff] }
0x121a   :  { %v2807_v50 = vpop.eup %2806  ;;  %v2763_v52 = vpop.permute.xlu1 %2762 }
0x121b   :  { %v2758_v55 = vpop.permute.xlu0 %2757  ;;  %v1382_v56 = vmul.f32 %v2807_v50, %v2801_v39  ;;  %v2765_v57 = vunpack.i.h.bf16 %v2763_v52  ;;  %v2764_v58 = vunpack.i.l.bf16 %v2763_v52  ;;  %v2809_v62 = vpop.eup %2808  ;;  %v2257_v39 = vld [vmem:[%s3415_s14 + $0x38] sm:$0xff] }
0x121c   :  { %v2760_v59 = vunpack.i.h.bf16 %v2758_v55  ;;  %v2759_v60 = vunpack.i.l.bf16 %v2758_v55  ;;  %v1384_v2 = vmul.f32 %v2809_v62, %v2799_v38  ;;  %v2256_v38 = vld [vmem:[%s3415_s14 + $0x30] sm:$0xff]  ;;  %v2253_v55 = vld [vmem:[%s3417_s13 + $0x1] ss:$0 sm:$0xff] }
0x121d   :  { %2504 = vmatprep.mubr.msk.f32.mxu0 %vm385_vm7, %v1382_v56  ;;  %v2673_v63 = vpack.c.bf16 %v2765_v57, %v2764_v58  ;;  %v2689_v40 = vpack.c.bf16 %v2257_v39, %v2256_v38 }
0x121e   :  { %v2663_v61 = vpack.c.bf16 %v2760_v59, %v2759_v60  ;;  %v2262_v60 = vld [vmem:[%s3418_s16 + $0x40] sm:$0xff] }
0x121f   :  { %2690 = vmatprep.subr.bf16.mxu1 %v2689_v40 }
0x1220   :  { %2664 = vmatprep.subr.bf16.mxu0 %v2663_v61  ;;  %2692 = vmatpush3.bf16.msra.mxu1 %v2689_v40 }
0x1221   :  { %2666 = vmatpush3.bf16.msra.mxu0 %v2663_v61  ;;  %v2263_v61 = vld [vmem:[%s3418_s16 + $0x48] sm:$0xff] }
0x1222   :  { %v2811_v1 = vpop.eup %2810  ;;  %2674 = vmatprep.subr.bf16.mxu0 %v2673_v63  ;;  %v2693_v62 = vpack.c.bf16 %v2263_v61, %v2262_v60 }
0x1223   :  { %v2813_v3 = vpop.eup %2812  ;;  %v1582_v4 = vmul.f32 %v2811_v1, %v2805_v43  ;;  %v2265_v1 = vld [vmem:[%s3418_s16 + $0x58] sm:$0xff] }
0x1224   :  { %2505 = vmatmul.mubr.msk.f32.vlgmr.msra.gmra.mrb[8].mxu0 %vm385_vm7, %v1384_v2  ;;  %v1584_v0 = vmul.f32 %v2813_v3, %v2803_v42  ;;  %v2266_v2 = vld [vmem:[%s3418_s16 + $0x60] sm:$0xff] }
0x1225   :  { %2676 = vmatpush3.bf16.msra.mxu0 %v2673_v63  ;;  %2518 = vmatprep.mubr.msk.f32.mxu0 %vm385_vm7, %v1582_v4  ;;  %v2264_v63 = vld [vmem:[%s3418_s16 + $0x50] sm:$0xff]  ;;  %v2267_v4 = vld [vmem:[%s3418_s16 + $0x68] sm:$0xff] }
0x1226   :  { %2678 = vmatprep.subr.bf16.mxu0 %v2677_v10  ;;  %v2697_v3 = vpack.c.bf16 %v2265_v1, %v2264_v63  ;;  %v2274_v63 = vld [vmem:[%s3422_s18] ss:$0 sm:$0xff] }
0x1228   :  { %2519 = vmatmul.mubr.msk.f32.vlgmr.msra.gmra.mrb[10].mxu0 %vm385_vm7, %v1584_v0  ;;  %v2701_v0 = vpack.c.bf16 %v2267_v4, %v2266_v2  ;;  %v2275_v4 = vld [vmem:[%s3423_s19] ss:$0 sm:$0xff] }
0x1229   :  { %2680 = vmatpush3.bf16.msra.mxu0 %v2677_v10  ;;  %v2259_v10 = vld [vmem:[%s3419_s15 + $0x1] ss:$0 sm:$0xff] }
0x122a   :  { %2682 = vmatprep.subr.bf16.mxu0 %v2681_v14 }
0x122d   :  { %2684 = vmatpush3.bf16.msra.mxu0 %v2681_v14 }
0x122e   :  { %2694 = vmatprep.subr.bf16.mxu0 %v2693_v62 }
0x12f7   :  { %v2506_v15 = vpop.f32.mrb[8].mxu0 }
0x12f8   :  { %v1463_v16 = vpop.f32.mrb[9].mxu0 }
0x12fb   :  { %v2520_v17 = vpop.f32.mrb[10].mxu0 }
0x12fc   :  { %1676 = vrot.lane.b32.xlu0 %v2520_v17, %s3457_s5  ;;  %v1663_v18 = vpop.f32.mrb[11].mxu0 }
0x12fd   :  { %1674 = vrot.lane.b32.xlu1 %v1663_v18, %s3457_s5 }
0x136e   :  { %v1677_v19 = vpop.permute.xlu0 %1676 }
0x136f   :  { %v1675_v7 = vpop.permute.xlu1 %1674  ;;  %v1681_v21 = vsel %vm385_vm7, %v2506_v15, %v1677_v19 }
0x1370   :  { %v1680_v20 = vsel %vm385_vm7, %v1463_v16, %v1675_v7 }
0x1371   :  { %2529 = vmatprep.mubr.msk.f32.mxu0 %vm243_vm6, %v1680_v20 }
0x1372   :  { %2530 = vmatmul.mubr.msk.f32.vlgmr.msra.gmra.mrb[12].mxu0 %vm243_vm6, %v1681_v21 }
0x1373   :  { %2696 = vmatpush3.bf16.msra.mxu0 %v2693_v62 }
0x1374   :  { %2698 = vmatprep.subr.bf16.mxu0 %v2697_v3 }
0x1377   :  { %2700 = vmatpush3.bf16.msra.mxu0 %v2697_v3 }
0x1378   :  { %2702 = vmatprep.subr.bf16.mxu0 %v2701_v0 }
0x137b   :  { %2704 = vmatpush3.bf16.msra.mxu0 %v2701_v0 }
0x137c   :  { %2706 = vmatprep.subr.bf16.mxu0 %v2705_v9 }
0x137f   :  { %2708 = vmatpush3.bf16.msra.mxu0 %v2705_v9 }
0x1445   :  { %v2531_v22 = vpop.f32.mrb[12].mxu0 }
0x1446   :  { %v1773_v23 = vadd.f32 %v2531_v22, %v2247_v6  ;;  %v1767_v51 = vpop.f32.mrb[13].mxu0 }
0x1447   :  { %v1768_v24 = vadd.f32 %v2247_v6, %v1767_v51 }
0x1448   :  { %v3301_v25 = vadd.f32 %v1773_v23, %v3203_v26 }
0x1449   :  { %v3304_v28 = vadd.f32 %v1768_v24, %v3206_v27 }
0x144a   :  { %v1785_v29 = vsel %vm243_vm6, %v3301_v25, 0.0 }
0x144b   :  { %1786 = vadd.xlane.f32.xlu0 %v1785_v29  ;;  %v1782_v30 = vsel %vm243_vm6, %v3304_v28, 0.0 }
0x144c   :  { %1783 = vadd.xlane.f32.xlu1 %v1782_v30 }
0x14d8   :  { %v1787_v31 = vpop.xlane.xlu0 %1786 }
0x14d9   :  { %v1789_v32 = vmul.f32 0.03125, %v1787_v31  ;;  %v1784_v33 = vpop.xlane.xlu1 %1783 }
0x14da   :  { %v1788_v34 = vmul.f32 0.03125, %v1784_v33 }
0x14db   :  { %v1791_v11 = vsub.f32 %v3301_v25, %v1789_v32 }
0x14dc   :  { %v1790_v26 = vsub.f32 %v3304_v28, %v1788_v34 }
0x14dd   :  { %v1793_v35 = vmul.f32 %v1791_v11, %v1791_v11 }
0x14de   :  { %v1792_v36 = vmul.f32 %v1790_v26, %v1790_v26 }
0x14df   :  { %v1797_v27 = vsel %vm243_vm6, %v1793_v35, 0.0 }
0x14e0   :  { %1798 = vadd.xlane.f32.xlu1 %v1797_v27  ;;  %v1794_v53 = vsel %vm243_vm6, %v1792_v36, 0.0 }
0x14e1   :  { %1795 = vadd.xlane.f32.xlu0 %v1794_v53 }
0x156d   :  { %v1799_v41 = vpop.xlane.xlu1 %1798 }
0x156e   :  { %v1801_v42 = vmul.f32 0.03125, %v1799_v41  ;;  %v1796_v43 = vpop.xlane.xlu0 %1795 }
0x156f   :  { %v1800_v44 = vmul.f32 0.03125, %v1796_v43 }
0x1570   :  { %v1803_v45 = vadd.f32 1e-05, %v1801_v42 }
0x1571   :  { %v1802_v46 = vadd.f32 1e-05, %v1800_v44 }
0x1572   :  { %2814 = vrsqrt.f32 %v1803_v45 }
0x1573   :  { %2816 = vrsqrt.f32 %v1802_v46 }
0x157c   :  { %v2815_v47 = vpop.eup %2814 }
0x157d   :  { %v2817_v49 = vpop.eup %2816  ;;  %v1807_v50 = vmul.f32 %v2815_v47, %v1791_v11 }
0x157e   :  { %v1806_v52 = vmul.f32 %v2817_v49, %v1790_v26  ;;  %v2271_v26 = vld [vmem:[%s3420_s17 + $0x1] ss:$0 sm:$0xff] }
0x157f   :  { %v1815_v56 = vmul.f32 %v2252_v48, %v1807_v50  ;;  %v2082_v50 = vld [vmem:[%s3421_s20 + $0x10] sm:$0xff] }
0x1580   :  { %v1814_v57 = vmul.f32 %v2252_v48, %v1806_v52  ;;  %v2081_v48 = vld [vmem:[%s3421_s20 + $0x8] sm:$0xff]  ;;  %v2083_v52 = vld [vmem:[%s3421_s20 + $0x18] sm:$0xff] }
0x1581   :  { %v1823_v59 = vadd.f32 %v2253_v55, %v1815_v56 }
0x1582   :  { %v1822_v58 = vadd.f32 %v2253_v55, %v1814_v57  ;;  %v2713_v55 = vpack.c.bf16 %v2083_v52, %v2082_v50 }
0x1584   :  { %2540 = vmatprep.mubr.msk.f32.mxu1 %vm243_vm6, %v1822_v58 }
0x1585   :  { %2541 = vmatmul.mubr.msk.f32.vlgmr.msra.gmra.mrb[16].mxu1 %vm243_vm6, %v1823_v59 }
0x1658   :  { %v2542_v13 = vpop.f32.mrb[16].mxu1 }
0x1659   :  { %v1915_v14 = vadd.f32 %v2542_v13, %v2259_v10  ;;  %v1909_v15 = vpop.f32.mrb[17].mxu1 }
0x165a   :  { %v1910_v16 = vadd.f32 %v2259_v10, %v1909_v15  ;;  %v2276_v10 = vld [vmem:[%s3424_s21] ss:$0 sm:$0xff] }
0x165b   :  { %v1921_v17 = vmul.f32 0.044715, %v1915_v14  ;;  %v1919_v33 = vmul.f32 0.5, %v1915_v14 }
0x165c   :  { %v1920_v18 = vmul.f32 0.044715, %v1910_v16  ;;  %v1918_v31 = vmul.f32 0.5, %v1910_v16 }
0x165d   :  { %v1923_v19 = vmul.f32 %v1921_v17, %v1915_v14 }
0x165e   :  { %v1922_v7 = vmul.f32 %v1920_v18, %v1910_v16 }
0x165f   :  { %v1925_v20 = vmul.f32 %v1923_v19, %v1915_v14 }
0x1660   :  { %v1924_v21 = vmul.f32 %v1922_v7, %v1910_v16 }
0x1661   :  { %v1927_v6 = vadd.f32 %v1925_v20, %v1915_v14 }
0x1662   :  { %v1926_v22 = vadd.f32 %v1924_v21, %v1910_v16 }
0x1663   :  { %v1929_v23 = vmul.f32 0.7978846, %v1927_v6 }
0x1664   :  { %v1928_v51 = vmul.f32 0.7978846, %v1926_v22 }
0x1665   :  { %2818 = vtanh.f32 %v1929_v23 }
0x1666   :  { %2820 = vtanh.f32 %v1928_v51 }
0x166f   :  { %v2819_v24 = vpop.eup %2818 }
0x1670   :  { %v2821_v29 = vpop.eup %2820  ;;  %v1933_v30 = vadd.f32 1.0, %v2819_v24 }
0x1671   :  { %v1932_v32 = vadd.f32 1.0, %v2821_v29 }
0x1672   :  { %v1935_v11 = vmul.f32 %v1933_v30, %v1919_v33 }
0x1673   :  { %v1934_v34 = vmul.f32 %v1932_v32, %v1918_v31 }
0x1675   :  { %2559 = vmatprep.mubr.msk.f32.mxu0 %vm157_vm3, %v1934_v34 }
0x1676   :  { %2560 = vmatmul.mubr.msk.f32.vlgmr.msra.gmra.mrb[14].mxu0 %vm157_vm3, %v1935_v11 }
0x1749   :  { %v2561_v35 = vpop.f32.mrb[14].mxu0 }
0x174a   :  { %v2031_v36 = vadd.f32 %v2561_v35, %v2271_v26  ;;  %v2025_v27 = vpop.f32.mrb[15].mxu0 }
0x174b   :  { %v2026_v53 = vadd.f32 %v2271_v26, %v2025_v27 }
0x174c   :  { %v2035_v12 = vadd.f32 %v2031_v36, %v3301_v25 }
0x174d   :  { %v2034_v37 = vadd.f32 %v2026_v53, %v3304_v28  ;;  %v2080_v28 = vld [vmem:[%s3421_s20] sm:$0xff] }
0x174e   :  { %v2041_v54 = vsel %vm243_vm6, %v2035_v12, 0.0  ;;  %v2709_v49 = vpack.c.bf16 %v2081_v48, %v2080_v28 }
0x174f   :  { %2042 = vadd.xlane.f32.xlu1 %v2041_v54  ;;  %v2038_v38 = vsel %vm243_vm6, %v2034_v37, 0.0 }
0x1750   :  { %2039 = vadd.xlane.f32.xlu0 %v2038_v38  ;;  %2710 = vmatprep.subr.bf16.mxu1 %v2709_v49 }
0x1751   :  { %2712 = vmatpush3.bf16.msra.mxu1 %v2709_v49 }
0x1752   :  { %2714 = vmatprep.subr.bf16.mxu1 %v2713_v55 }
0x1755   :  { %2716 = vmatpush3.bf16.msra.mxu1 %v2713_v55 }
0x17dc   :  { %v2043_v39 = vpop.xlane.xlu1 %2042 }
0x17dd   :  { %v2045_v40 = vmul.f32 0.03125, %v2043_v39  ;;  %v2040_v41 = vpop.xlane.xlu0 %2039 }
0x17de   :  { %v2044_v42 = vmul.f32 0.03125, %v2040_v41 }
0x17df   :  { %v2047_v43 = vsub.f32 %v2035_v12, %v2045_v40 }
0x17e0   :  { %v2046_v44 = vsub.f32 %v2034_v37, %v2044_v42 }
0x17e1   :  { %v2049_v45 = vmul.f32 %v2047_v43, %v2047_v43 }
0x17e2   :  { %v2048_v46 = vmul.f32 %v2046_v44, %v2046_v44 }
0x17e3   :  { %v2053_v47 = vsel %vm243_vm6, %v2049_v45, 0.0 }
0x17e4   :  { %2054 = vadd.xlane.f32.xlu1 %v2053_v47  ;;  %v2050_v25 = vsel %vm243_vm6, %v2048_v46, 0.0 }
0x17e5   :  { %2051 = vadd.xlane.f32.xlu0 %v2050_v25 }
0x1871   :  { %v2055_v56 = vpop.xlane.xlu1 %2054 }
0x1872   :  { %v2057_v57 = vmul.f32 0.03125, %v2055_v56  ;;  %v2052_v58 = vpop.xlane.xlu0 %2051 }
0x1873   :  { %v2056_v59 = vmul.f32 0.03125, %v2052_v58 }
0x1874   :  { %v2059_v60 = vadd.f32 1e-05, %v2057_v57 }
0x1875   :  { %v2058_v61 = vadd.f32 1e-05, %v2056_v59 }
0x1876   :  { %2822 = vrsqrt.f32 %v2059_v60 }
0x1877   :  { %2824 = vrsqrt.f32 %v2058_v61 }
0x1880   :  { %v2823_v62 = vpop.eup %2822 }
0x1881   :  { %v2825_v1 = vpop.eup %2824  ;;  %v2063_v2 = vmul.f32 %v2823_v62, %v2047_v43 }
0x1882   :  { %v2062_v3 = vmul.f32 %v2825_v1, %v2046_v44 }
0x1883   :  { %v2071_v0 = vmul.f32 %v2274_v63, %v2063_v2 }
0x1884   :  { %v2070_v5 = vmul.f32 %v2274_v63, %v2062_v3 }
0x1885   :  { %v2079_v9 = vadd.f32 %v2275_v4, %v2071_v0 }
0x1886   :  { %v2078_v8 = vadd.f32 %v2275_v4, %v2070_v5 }
0x1888   :  { %2570 = vmatprep.mubr.msk.f32.mxu1 %vm243_vm6, %v2078_v8 }
0x1889   :  { %2571 = vmatmul.mubr.msk.f32.vlgmr.msra.gmra.mrb[18].mxu1 %vm243_vm6, %v2079_v9 }
0x195c   :  { %v2572_v13 = vpop.f32.mrb[18].mxu1 }
0x195d   :  { %v2169_v14 = vadd.f32 %v2572_v13, %v2276_v10  ;;  %v2163_v15 = vpop.f32.mrb[19].mxu1 }
0x195e   :  { %v2164_v16 = vadd.f32 %v2276_v10, %v2163_v15 }
0x195f   :  { %2173 = vst [vmem:[%s3425_s22 + $0x8] sm:$0xff] %v2169_v14 }
0x1960   :  { %2172 = vst [vmem:[%s3425_s22] sm:$0xff] %v2164_v16 }

</bundles_post_ra>
